<compile_context>
chip_gen: v7x
topology: tpu7x:2x2x1
jax: 0.10.0
libtpu: 0.0.40
codegen_flags: <defaults>
</compile_context>

<pallas_src>
import functools

import jax
import jax.numpy as jnp
from jax.experimental import pallas as pl
from jax.experimental.pallas import tpu as pltpu

_LANE = 128


def _round_up(x, m):
    return (x + m - 1) // m * m


def _resident_spec(block_shape):
    """BlockSpec for a grid-invariant operand: single-buffered (saves VMEM)."""
    index_map = lambda i: (0,) * len(block_shape)
    try:
        return pl.BlockSpec(block_shape, index_map,
                            pipeline_mode=pl.Buffered(1))
    except TypeError:  # very old jax without pipeline_mode kwarg
        return pl.BlockSpec(block_shape, index_map)


def _vmem_cap_bytes():
    """~3/4 of physical per-core VMEM (headroom for compiler scratch/sems)."""
    try:
        phys = int(pltpu.get_tpu_info().vmem_capacity_bytes)
    except Exception:
        phys = 64 * 2**20  # conservative (v7x) fallback
    return (phys * 3) // 4


def mlp_kernel(x_ref, w1_ref, b1_ref, w2_ref, b2_ref, o_ref):
    # Cast x to the MXU input dtype in-kernel (no separate wrapper pass).
    x = x_ref[...].astype(jnp.bfloat16)
    # Layer 1: Linear -> (Dropout = id) -> ReLU.  bf16 MXU, f32 accumulate.
    h = jnp.dot(x, w1_ref[...], preferred_element_type=jnp.float32)
    h = jnp.maximum(h + b1_ref[...], 0.0)          # b1 is (1, H), broadcasts
    # Layer 2: Linear -> (Dropout = id) -> ReLU.
    h = jnp.dot(h.astype(jnp.bfloat16), w2_ref[...],
                preferred_element_type=jnp.float32)
    h = jnp.maximum(h + b2_ref[...], 0.0)
    o_ref[...] = h.astype(o_ref.dtype)


def prepare_mlp_params(w1, b1, w2, b2):
    """Pad feature dims to lane multiples and cast weights to bf16 ONCE.

    w1: [D, H]; b1: [H]; w2: [H, H]; b2: [H]  (i.e. transposes of the PyTorch
    nn.Linear weights).  Returns (padded_arrays, out_features).
    """
    D, H = w1.shape
    Dp = _round_up(D, _LANE)
    Hp = _round_up(H, _LANE)
    cd = jnp.bfloat16
    w1p = jnp.pad(w1.astype(cd), ((0, Dp - D), (0, Hp - H)))
    w2p = jnp.pad(w2.astype(cd), ((0, Hp - H), (0, Hp - H)))
    b1p = jnp.pad(b1.reshape(1, -1).astype(jnp.float32), ((0, 0), (0, Hp - H)))
    b2p = jnp.pad(b2.reshape(1, -1).astype(jnp.float32), ((0, 0), (0, Hp - H)))
    return (w1p, b1p, w2p, b2p), H


@functools.partial(jax.jit,
                   static_argnames=("out_features", "row_tile", "out_dtype"))
def _mlp_forward_impl(x, w1p, b1p, w2p, b2p, *, out_features,
                      row_tile=512, out_dtype=None):
    lead, D = x.shape[:-1], x.shape[-1]
    H = out_features
    Dp, Hp = w1p.shape
    x2 = x.reshape(-1, D)
    M = x2.shape[0]

    out_dtype = x.dtype if out_dtype is None else jnp.dtype(out_dtype)
    x_bytes = jnp.dtype(x.dtype).itemsize
    out_bytes = jnp.dtype(out_dtype).itemsize

    # Row tiling: big tiles amortize the ~0.35 us/step overhead; keep >= 2
    # tiles when possible so v7x's two TensorCores both get work.
    tm = min(row_tile, _round_up(M, 8))
    if M >= 2 * _LANE and pl.cdiv(M, tm) < 2:
        tm = _round_up(pl.cdiv(M, 2), 8)
    Mp = _round_up(M, tm)

    # Pad x only when actually needed (original dtype; cast happens in-kernel).
    if (Dp != D) or (Mp != M):
        x2 = jnp.pad(x2, ((0, Mp - M), (0, Dp - D)))

    # VMEM budget: double-buffered x/out tiles, single-buffered weights/biases,
    # f32 intermediate + the bf16 copies materialized by the in-kernel casts.
    vmem_needed = (
        2 * tm * Dp * x_bytes            # x tiles (double-buffered)
        + Dp * Hp * 2 + Hp * Hp * 2      # bf16 weights (single-buffered)
        + 2 * Hp * 4                     # f32 biases
        + 2 * tm * Hp * out_bytes        # out tiles (double-buffered)
        + tm * Hp * 4                    # f32 intermediate h
        + tm * Hp * 2                    # bf16 copy of h
        + tm * Dp * 2                    # bf16 copy of x
    )
    vmem_limit = int(min(_vmem_cap_bytes(),
                         max(32 * 2**20, (vmem_needed * 5) // 4)))

    cost = pl.CostEstimate(
        flops=int(2 * Mp * Hp * (Dp + Hp)),
        transcendentals=0,
        bytes_accessed=int(Mp * Dp * x_bytes + Dp * Hp * 2 + Hp * Hp * 2
                           + 2 * Hp * 4 + Mp * Hp * out_bytes),
    )

    out = pl.pallas_call(
        mlp_kernel,
        out_shape=jax.ShapeDtypeStruct((Mp, Hp), out_dtype),
        grid_spec=pltpu.PrefetchScalarGridSpec(
            num_scalar_prefetch=0,
            grid=(Mp // tm,),
            in_specs=[
                pl.BlockSpec((tm, Dp), lambda i: (i, 0)),   # x row tile
                _resident_spec((Dp, Hp)),                   # W1 (resident)
                _resident_spec((1, Hp)),                    # b1
                _resident_spec((Hp, Hp)),                   # W2 (resident)
                _resident_spec((1, Hp)),                    # b2
            ],
            out_specs=pl.BlockSpec((tm, Hp), lambda i: (i, 0)),
        ),
        compiler_params=pltpu.CompilerParams(
            dimension_semantics=("parallel",),
            vmem_limit_bytes=vmem_limit,
        ),
        cost_estimate=cost,
    )(x2, w1p, b1p, w2p, b2p)

    return out[:M, :H].reshape(*lead, H)


def mlp_forward(x, params, *, row_tile=512, out_dtype=None):
    """x: [..., D]; params from prepare_mlp_params -> [..., H]."""
    (w1p, b1p, w2p, b2p), out_features = params
    return _mlp_forward_impl(x, w1p, b1p, w2p, b2p, out_features=out_features,
                             row_tile=row_tile, out_dtype=out_dtype)


def mlp_reference(x, w1, b1, w2, b2):
    """Pure-JAX reference with matching bf16-input / f32-accumulate math."""
    cd = jnp.bfloat16
    h = jnp.dot(x.astype(cd), w1.astype(cd),
                preferred_element_type=jnp.float32)
    h = jnp.maximum(h + b1.reshape(1, -1).astype(jnp.float32), 0.0)
    h = jnp.dot(h.astype(cd), w2.astype(cd),
                preferred_element_type=jnp.float32)
    h = jnp.maximum(h + b2.reshape(1, -1).astype(jnp.float32), 0.0)
    return h.astype(x.dtype)


def init_linear_params(key, fan_in, fan_out, dtype=jnp.float32):
    """PyTorch nn.Linear default init: U(-1/sqrt(fan_in), 1/sqrt(fan_in))."""
    kw, kb = jax.random.split(key)
    bound = 1.0 / (fan_in ** 0.5)
    # Stored as (in, out) so the kernel computes x @ W.
    w = jax.random.uniform(kw, (fan_in, fan_out), dtype, -bound, bound)
    b = jax.random.uniform(kb, (fan_out,), dtype, -bound, bound)
    return w, b


if __name__ == "__main__":
    # Module defaults: embed_dim=512, middle_dim=512, n_layer=2 (lane-dense).
    embed_dim, middle_dim = 512, 512
    batch, seq = 2, 128                    # 256 rows -> split into 2 row tiles

    key = jax.random.PRNGKey(0)
    kx, k1, k2, kx2, k3, k4 = jax.random.split(key, 6)

    x = jax.random.normal(kx, (batch, seq, embed_dim), jnp.float32)
    w1, b1 = init_linear_params(k1, embed_dim, middle_dim)
    w2, b2 = init_linear_params(k2, middle_dim, middle_dim)

    # Parameters are padded / cast once, OUTSIDE the jitted per-call forward.
    params = prepare_mlp_params(w1, b1, w2, b2)
    out = jax.block_until_ready(mlp_forward(x, params))
    ref = mlp_reference(x, w1, b1, w2, b2)
    assert out.shape == (batch, seq, middle_dim)
    assert jnp.allclose(out, ref, atol=1e-2, rtol=1e-2), float(
        jnp.max(jnp.abs(out - ref)))

    # Non-128-aligned, non-tile-divisible shapes exercise the padding path.
    xs = jax.random.normal(kx2, (10, 40), jnp.float32)
    ws1, bs1 = init_linear_params(k3, 40, 72)
    ws2, bs2 = init_linear_params(k4, 72, 72)
    params_s = prepare_mlp_params(ws1, bs1, ws2, bs2)
    outs = jax.block_until_ready(mlp_forward(xs, params_s))
    refs = mlp_reference(xs, ws1, bs1, ws2, bs2)
    assert outs.shape == (10, 72)
    assert jnp.allclose(outs, refs, atol=1e-2, rtol=1e-2), float(
        jnp.max(jnp.abs(outs - refs)))

    print("KERNEL_OK")
</pallas_src>

<mosaic_0001>
module attributes {stable_mosaic.version = 11 : i64} {
  func.func @mlp_kernel(%arg0: i32, %arg1: memref<128x512xf32, #tpu.memory_space<vmem>>, %arg2: memref<512x512xbf16, #tpu.memory_space<vmem>>, %arg3: memref<1x512xf32, #tpu.memory_space<vmem>>, %arg4: memref<512x512xbf16, #tpu.memory_space<vmem>>, %arg5: memref<1x512xf32, #tpu.memory_space<vmem>>, %arg6: memref<128x512xf32, #tpu.memory_space<vmem>>) attributes {dimension_semantics = [#tpu.dimension_semantics<parallel>], iteration_bounds = array<i64: 2>, scalar_prefetch = 0 : i64, scratch_operands = 0 : i64, tpu.core_type = #tpu.core_type<tc>, window_params = [{transform_indices = @transform_0, window_bounds = array<i64: 128, 512>}, {pipeline_mode = #tpu.pipeline_mode<synchronous>, transform_indices = @transform_1, window_bounds = array<i64: 512, 512>}, {pipeline_mode = #tpu.pipeline_mode<synchronous>, transform_indices = @transform_2, window_bounds = array<i64: 1, 512>}, {pipeline_mode = #tpu.pipeline_mode<synchronous>, transform_indices = @transform_3, window_bounds = array<i64: 512, 512>}, {pipeline_mode = #tpu.pipeline_mode<synchronous>, transform_indices = @transform_4, window_bounds = array<i64: 1, 512>}, {transform_indices = @transform_5, window_bounds = array<i64: 128, 512>}]} {
    %c0 = arith.constant 0 : index
    %c0_0 = arith.constant 0 : index
    %0 = vector.load %arg1[%c0, %c0_0] : memref<128x512xf32, #tpu.memory_space<vmem>>, vector<128x512xf32>
    %1 = arith.truncf %0 : vector<128x512xf32> to vector<128x512xbf16>
    %c0_1 = arith.constant 0 : index
    %c0_2 = arith.constant 0 : index
    %2 = vector.load %arg2[%c0_1, %c0_2] : memref<512x512xbf16, #tpu.memory_space<vmem>>, vector<512x512xbf16>
    %cst = arith.constant dense<0.000000e+00> : vector<128x512xf32>
    %3 = tpu.matmul %1, %2, %cst {dimension_numbers = #tpu.dot_dimension_numbers<[1], [0], [0], [1], [0, 0, 1, 1], [], []>} : vector<128x512xbf16>, vector<512x512xbf16>, vector<128x512xf32> -> vector<128x512xf32>
    %c0_3 = arith.constant 0 : index
    %c0_4 = arith.constant 0 : index
    %4 = vector.load %arg3[%c0_3, %c0_4] : memref<1x512xf32, #tpu.memory_space<vmem>>, vector<1x512xf32>
    %5 = vector.broadcast %4 : vector<1x512xf32> to vector<128x512xf32>
    %6 = arith.addf %3, %5 : vector<128x512xf32>
    %cst_5 = arith.constant 0.000000e+00 : f32
    %7 = vector.broadcast %cst_5 : f32 to vector<128x512xf32>
    %8 = arith.maximumf %6, %7 : vector<128x512xf32>
    %9 = arith.truncf %8 : vector<128x512xf32> to vector<128x512xbf16>
    %c0_6 = arith.constant 0 : index
    %c0_7 = arith.constant 0 : index
    %10 = vector.load %arg4[%c0_6, %c0_7] : memref<512x512xbf16, #tpu.memory_space<vmem>>, vector<512x512xbf16>
    %cst_8 = arith.constant dense<0.000000e+00> : vector<128x512xf32>
    %11 = tpu.matmul %9, %10, %cst_8 {dimension_numbers = #tpu.dot_dimension_numbers<[1], [0], [0], [1], [0, 0, 1, 1], [], []>} : vector<128x512xbf16>, vector<512x512xbf16>, vector<128x512xf32> -> vector<128x512xf32>
    %c0_9 = arith.constant 0 : index
    %c0_10 = arith.constant 0 : index
    %12 = vector.load %arg5[%c0_9, %c0_10] : memref<1x512xf32, #tpu.memory_space<vmem>>, vector<1x512xf32>
    %13 = vector.broadcast %12 : vector<1x512xf32> to vector<128x512xf32>
    %14 = arith.addf %11, %13 : vector<128x512xf32>
    %cst_11 = arith.constant 0.000000e+00 : f32
    %15 = vector.broadcast %cst_11 : f32 to vector<128x512xf32>
    %16 = arith.maximumf %14, %15 : vector<128x512xf32>
    %c0_12 = arith.constant 0 : index
    %c0_13 = arith.constant 0 : index
    %17 = vector.load %arg6[%c0_12, %c0_13] : memref<128x512xf32, #tpu.memory_space<vmem>>, vector<128x512xf32>
    tpu.vector_store %arg6[%c0_12, %c0_13], %16 {strides = array<i32>} : memref<128x512xf32, #tpu.memory_space<vmem>>, vector<128x512xf32>,
    return
  }
  func.func @transform_0(%arg0: i32) -> (i32, i32) {
    %c0_i32 = arith.constant 0 : i32
    %c0_i32_0 = arith.constant 0 : i32
    return %arg0, %c0_i32 : i32, i32
  }
  func.func @transform_1(%arg0: i32) -> (i32, i32) {
    %c0_i32 = arith.constant 0 : i32
    %c0_i32_0 = arith.constant 0 : i32
    %c0_i32_1 = arith.constant 0 : i32
    return %c0_i32, %c0_i32_0 : i32, i32
  }
  func.func @transform_2(%arg0: i32) -> (i32, i32) {
    %c0_i32 = arith.constant 0 : i32
    %c0_i32_0 = arith.constant 0 : i32
    %c0_i32_1 = arith.constant 0 : i32
    return %c0_i32, %c0_i32_0 : i32, i32
  }
  func.func @transform_3(%arg0: i32) -> (i32, i32) {
    %c0_i32 = arith.constant 0 : i32
    %c0_i32_0 = arith.constant 0 : i32
    %c0_i32_1 = arith.constant 0 : i32
    return %c0_i32, %c0_i32_0 : i32, i32
  }
  func.func @transform_4(%arg0: i32) -> (i32, i32) {
    %c0_i32 = arith.constant 0 : i32
    %c0_i32_0 = arith.constant 0 : i32
    %c0_i32_1 = arith.constant 0 : i32
    return %c0_i32, %c0_i32_0 : i32, i32
  }
  func.func @transform_5(%arg0: i32) -> (i32, i32) {
    %c0_i32 = arith.constant 0 : i32
    %c0_i32_0 = arith.constant 0 : i32
    return %arg0, %c0_i32 : i32, i32
  }
}

</mosaic_0001>

<bundles_post_ra>
// kernel: _mlp_forward_impl.1
= control target key start
LH: loop header
LB: loop body
LE: loop exit
PB: predicated region body
PF: predicated region fallthrough
CT: control target
= control target key end

     0   :  { %10 = vsyncpa [#allocation3], 0  ;;  %s4976_s0 = inlined_call_operand.hbm [shape: f32[256,512], index: 0, kind: input, shape index: {}]   ;;  %s4977_s1 = inlined_call_operand.hbm [shape: bf16[512,512], index: 1, kind: input, shape index: {}]   ;;  %s4978_s2 = inlined_call_operand.vmem [shape: f32[1,512], index: 2, kind: input, shape index: {}]   ;;  %s4979_s3 = inlined_call_operand.hbm [shape: bf16[512,512], index: 3, kind: input, shape index: {}]   ;;  %s4980_s4 = inlined_call_operand.vmem [shape: f32[1,512], index: 4, kind: input, shape index: {}]   ;;  %s4981_s5 = inlined_call_operand.hbm [shape: f32[256,512], index: 5, kind: output, shape index: {}]  }
   0x1   :  { %12 = vsyncpa [#allocation3 + $0x1], 0 }
   0x2   :  { %13 = vsyncpa [#allocation6], 0 }
   0x3   :  { %14 = vsyncpa [#allocation4], 0 }
   0x4   :  { %16 = vsyncpa [#allocation4 + $0x1], 0  ;;  %s4377_s18 = smov 0   ;;  %s4379_s19 = smov 0  }
   0x5   :  { %s4381_s20 = smov 0   ;;  %s4383_s21 = smov 0  }
   0x6 LB: > { %s4398_s22 = sadd.s32 4294967295, %s4335_s21   ;;  %s3186_s23 = sadd.s32 4294967294, %s4335_s21   ;;  %s4335_s21 = sphi %s4383_s21, %s5001_s21   ;;  %s4331_s20 = sphi %s4381_s20, %s5000_s20   ;;  %s4327_s19 = sphi %s4379_s19, %s4999_s19   ;;  %s4323_s18 = sphi %s4377_s18, %s4998_s18  }
   0x7   : > { %p42_p0 = scmp.ne.s32.totalorder %s4327_s19, %s4323_s18  ;;  %p4982_p1 = scmp.eq.s32.totalorder %s4398_s22, 0 }
   0x8   : > { %p156_p3 = scmp.eq.s32.totalorder %s3186_s23, 1  ;;  %p3187_p5 = scmp.ge.s32.totalorder %s4335_s21, 1 }
   0x9   : > { %p4407_p4 = por %p4982_p1, %p42_p0  ;;  %p163_p7 = scmp.lt.s32.totalorder %s4335_s21, 3 }
   0xa   : > { %p4412_p6 = por %p156_p3, %p42_p0  ;;  %s4337_s27 = smov [#allocation5]  }
   0xb   : > { %s4985_s24 = scalar_select %p4407_p4, 1, 0 }
   0xc   : > { %s4986_s25 = scalar_select %p4412_p6, 1, 0 }
   0xd   : > { %p4417_p8 = pnand %p3187_p5, %p163_p7  ;;  %s175_s28 = sshll.u32 %s4337_s27, 4  ;;  %s4421_s28 = int_to_ptr.vmem [resolvable:$true] %s175_s28 }
   0xe   : > { %s4338_s30 = smov [#allocation7]   ;;  %s4179_s9 = scalar_lea.hbm %s4977_s1, 16384 }
   0xf   : > { %p3734_p9 = pneg %p4417_p8  ;;  %s191_s6 = sshll.u32 %s4338_s30, 4  ;;  %s4432_s6 = int_to_ptr.vmem [resolvable:$true] %s191_s6 }
  0x10   : > { %p4180_p12 = scmp.ne.s32.totalorder %s4977_s1, %s4179_s9  ;;  %p4186_p5 = scmp.lt.u32.totalorder %s4179_s9, %s4977_s1 }
  0x11   : > { %p4428_p11 = pnand %p3734_p9, %p4982_p1 }
  0x13   : > { %p4181_p13 = pneg %p4428_p11 }
  0x15   : > { %p4182_p0 = pnand %p4181_p13, %p4180_p12 }
  0x17   : > { %p4183_p3 = pneg %p4182_p0 }
  0x19   : > { %p4188_p7 = pnand %p4186_p5, %p4183_p3 }
  0x1b   : > { %4191 = shalt.err (!%p4188_p7)
}
  0x1c   : > { %s4192_s14 = scalar_lea.vmem %s4421_s28, 16384  ;;  %p4200_p2 = scmp.lt.s32.totalorder %s4421_s28, %s4421_s28 }
  0x1d   : > { %p4193_p9 = scmp.ne.s32.totalorder %s4421_s28, %s4192_s14  ;;  %p4201_p12 = scmp.lt.s32.totalorder %s4192_s14, %s4192_s14 }
  0x1f   : > { %p4195_p10 = pnand %p4193_p9, %p4181_p13  ;;  %p4202_p0 = por %p4201_p12, %p4200_p2 }
  0x21   : > { %p4196_p1 = pneg %p4195_p10 }
  0x23   : > { %p4203_p6 = pnand %p4202_p0, %p4196_p1 }
  0x25   : > { %4206 = shalt.err (!%p4203_p6)
}
  0x26   : > { %s4339_s15 = smov 256   ;;  %s4340_s16 = smov 16  }
  0x27   : > { %3737 = dma.hbm_to_vmem [thread:$0]  (!%p4428_p11), %s4977_s1, 16384, %s4421_s28, [#allocation6], %s4339_s15, %s4339_s15, %s4340_s16  }
  0x28   : > { %s4207_s7 = scalar_lea.hbm %s4979_s3, 16384 }
  0x29   : > { %p4208_p2 = scmp.ne.s32.totalorder %s4979_s3, %s4207_s7  ;;  %p4214_p10 = scmp.lt.u32.totalorder %s4207_s7, %s4979_s3 }
  0x2b   : > { %p4210_p1 = pnand %p4208_p2, %p4181_p13 }
  0x2d   : > { %p4211_p6 = pneg %p4210_p1 }
  0x2f   : > { %p4216_p3 = pnand %p4214_p10, %p4211_p6 }
  0x31   : > { %4219 = shalt.err (!%p4216_p3)
}
  0x32   : > { %s4220_s28 = scalar_lea.vmem %s4432_s6, 16384  ;;  %p4228_p12 = scmp.lt.s32.totalorder %s4432_s6, %s4432_s6 }
  0x33   : > { %p4221_p5 = scmp.ne.s32.totalorder %s4432_s6, %s4220_s28  ;;  %p4229_p0 = scmp.lt.s32.totalorder %s4220_s28, %s4220_s28 }
  0x35   : > { %p4223_p7 = pnand %p4221_p5, %p4181_p13  ;;  %p4230_p2 = por %p4229_p0, %p4228_p12 }
  0x37   : > { %p4224_p9 = pneg %p4223_p7 }
  0x39   : > { %p4231_p1 = pnand %p4230_p2, %p4224_p9 }
  0x3b   : > { %4234 = shalt.err (!%p4231_p1)
}
  0x3c   : > { %3740 = dma.hbm_to_vmem [thread:$0]  (!%p4428_p11), %s4979_s3, 16384, %s4432_s6, [#allocation6], %s4339_s15, %s4339_s15, %s4340_s16  }
  0x3d   : > { %s4487_s14 = sadd.s32 1, %s4335_s21   ;;  %s29_s29 = sadd.s32 1, %s4331_s20 }
  0x3e   : > { %s26_s17 = ssub.s32 %s4335_s21, %s4487_s14  ;;  %p36_p13 = scmp.ne.s32.totalorder %s4331_s20, %s4327_s19 }
  0x3f   : > { %p27_p6 = scmp.eq.s32.totalorder %s26_s17, 0  ;;  %p37_p10 = scmp.eq.s32.totalorder %s4335_s21, 0 }
  0x40   : > { %p4989_p3 = scmp.eq.s32.totalorder %s4398_s22, 1  ;;  %p3751_p7 = scmp.lt.s32.totalorder %s4335_s21, 2 }
  0x41   : > { %s4503_s27 = scalar_select %p27_p6, %s4331_s20, %s29_s29  }
  0x42   : > { %p4497_p5 = por %p4989_p3, %p36_p13  ;;  %p38_p9 = por %p37_p10, %p36_p13 }
  0x43   : > { %s208_s30 = sand.u32 1, %s4331_s20   ;;  %s3463_s6 = sshll.u32 %s4335_s21, 13 }
  0x44   : > { %s4990_s23 = scalar_select %p4497_p5, 1, 0 }
  0x45   : > { %s3191_s7 = sshll.u32 %s208_s30, 9  ;;  %s4510_s8 = scalar_lea.hbm %s4976_s0, %s3463_s6 }
  0x46   : > { %s212_s9 = scalar_lea.vmem [#allocation2], %s3191_s7  ;;  %p4514_p11 = pnand %p3751_p7, %p38_p9 }
  0x47   : > { %s220_s10 = sshll.u32 %s212_s9, 4  ;;  %s4518_s28 = scalar_lea.sflag [#allocation3], %s208_s30  ;;  %s4512_s10 = int_to_ptr.vmem [resolvable:$true] %s220_s10 }
  0x48   : > { %s4235_s12 = scalar_lea.hbm %s4510_s8, 8192  ;;  %p4237_p0 = pneg %p4514_p11 }
  0x49   : > { %p4236_p12 = scmp.ne.s32.totalorder %s4510_s8, %s4235_s12  ;;  %s4240_s17 = scalar_lea.hbm %s4976_s0, 16384 }
  0x4a   : > { %p4241_p13 = scmp.lt.u32.totalorder %s4510_s8, %s4976_s0  ;;  %p4242_p6 = scmp.lt.u32.totalorder %s4240_s17, %s4235_s12 }
  0x4b   : > { %p4238_p2 = pnand %p4237_p0, %p4236_p12  ;;  %p4244_p3 = scmp.lt.u32.totalorder %s4235_s12, %s4510_s8 }
  0x4c   : > { %p4243_p10 = por %p4242_p6, %p4241_p13 }
  0x4d   : > { %p4239_p1 = pneg %p4238_p2 }
  0x4e   : > { %p4245_p7 = por %p4244_p3, %p4243_p10 }
  0x50   : > { %p4246_p9 = pnand %p4245_p7, %p4239_p1 }
  0x52   : > { %4249 = shalt.err (!%p4246_p9)
}
  0x53   : > { %s4250_s30 = scalar_lea.vmem %s4512_s10, 8192  ;;  %s4341_s15 = smov [#allocation2]  }
  0x54   : > { %p4251_p12 = scmp.ne.s32.totalorder %s4512_s10, %s4250_s30  ;;  %s4255_s16 = sshll.u32 %s4341_s15, 4  ;;  %s4256_s16 = int_to_ptr.vmem [resolvable:$false] %s4255_s16 }
  0x55   : > { %s4257_s9 = scalar_lea.vmem %s4256_s16, 16384  ;;  %p4258_p4 = scmp.lt.s32.totalorder %s4512_s10, %s4256_s16 }
  0x56   : > { %p4253_p2 = pnand %p4251_p12, %p4237_p0  ;;  %p4259_p13 = scmp.lt.s32.totalorder %s4257_s9, %s4250_s30 }
  0x58   : > { %p4254_p5 = pneg %p4253_p2  ;;  %p4260_p6 = por %p4259_p13, %p4258_p4 }
  0x5a   : > { %p4261_p10 = pnand %p4260_p6, %p4254_p5 }
  0x5c   : > { %4264 = shalt.err (!%p4261_p10)
}
  0x5d   : > { %s4342_s12 = smov 512   ;;  %s4343_s13 = smov 32  }
  0x5e   : > { %3744 = dma.hbm_to_vmem [thread:$0]  (!%p4514_p11), %s4510_s8, 8192, %s4512_s10, %s4518_s28, %s4342_s12, %s4342_s12, %s4343_s13  }
  0x5f   : > { %232 = sbr.rel (%p4417_p8) target bundleno = 812 (0x32c), region = 40  ;;  %s4549_s29 = sand.u32 (!%p4417_p8), 1, %s4327_s19  }
  0x60   : > { %s3196_s17 = sshll.u32 (!%p4417_p8), %s4549_s29, 9  ;;  %s235_s7 = scalar_lea.sflag (!%p4417_p8), [#allocation3], %s4549_s29 }
  0x61   : > { %s4555_s6 = scalar_lea.vmem (!%p4417_p8), [#allocation2], %s3196_s17  ;;  %p4992_p4 = scmp.ne.s32.totalorder (!%p4417_p8), %s4985_s24, 0 }
  0x66   : > { %4310 = dma.done.wait (%p4992_p4), %s235_s7, 8192  }
  0x67   : > { %4312 = vsyncadd (%p4992_p4), %s235_s7, 4294959104  ;;  %p4993_p5 = scmp.eq.s32.totalorder %s4398_s22, 0 }
  0x69   : > { %4314 = dma.done.wait (%p4993_p5), [#allocation6], 32768   ;;  %p4994_p8 = pmov %p4993_p5 }
  0x6a   : > { %v3795_v0 = vld [vmem:[#allocation5 + $0x4] ss:$16 sps:$4 sm:$0xff]   ;;  %v3797_v1 = vld [vmem:[#allocation5 + $0xc] ss:$16 sps:$4 sm:$0xff]   ;;  %v3799_v2 = vld [vmem:[#allocation5] ss:$16 sps:$4 sm:$0xff]  }
  0x6b   : > { %4316 = vsyncadd (%p4994_p8), [#allocation6], 4294934528  ;;  %1161 = vmatprep.subr.bf16.mxu0 %v3795_v0  ;;  %v3800_v3 = vld [vmem:[#allocation5 + $0x8] ss:$16 sps:$4 sm:$0xff]   ;;  %1387 = vmatprep.subr.bf16.mxu1 %v3797_v1  ;;  %v3801_v4 = vld [vmem:[#allocation5 + $0x24] ss:$16 sps:$4 sm:$0xff]  }
  0x6c   : > { %1162 = vmatpush1.bf16.msra.mxu0 %v3799_v2  ;;  %1388 = vmatpush1.bf16.msra.mxu1 %v3800_v3  ;;  %v3803_v5 = vld [vmem:[#allocation5 + $0x2c] ss:$16 sps:$4 sm:$0xff]   ;;  %v3805_v6 = vld [vmem:[#allocation5 + $0x20] ss:$16 sps:$4 sm:$0xff]   ;;  %v3806_v7 = vld [vmem:[#allocation5 + $0x28] ss:$16 sps:$4 sm:$0xff]  }
  0x6d   : > { %1163 = vmatprep.subr.bf16.mxu0 %v3801_v4  ;;  %1389 = vmatprep.subr.bf16.mxu1 %v3803_v5  ;;  %v3807_v8 = vld [vmem:[#allocation5 + $0x44] ss:$16 sps:$4 sm:$0xff]   ;;  %v3809_v9 = vld [vmem:[#allocation5 + $0x4c] ss:$16 sps:$4 sm:$0xff]   ;;  %v3811_v10 = vld [vmem:[#allocation5 + $0x40] ss:$16 sps:$4 sm:$0xff]  }
  0x6e   : > { %v3812_v11 = vld [vmem:[#allocation5 + $0x48] ss:$16 sps:$4 sm:$0xff]   ;;  %v3813_v12 = vld [vmem:[#allocation5 + $0x64] ss:$16 sps:$4 sm:$0xff]   ;;  %v3815_v13 = vld [vmem:[#allocation5 + $0x6c] ss:$16 sps:$4 sm:$0xff]  }
  0x6f   : > { %v3817_v14 = vld [vmem:[#allocation5 + $0x60] ss:$16 sps:$4 sm:$0xff]   ;;  %v3818_v15 = vld [vmem:[#allocation5 + $0x68] ss:$16 sps:$4 sm:$0xff]   ;;  %v3819_v16 = vld [vmem:[#allocation5 + $0x84] ss:$16 sps:$4 sm:$0xff]  }
  0x70   : > { %1164 = vmatpush1.bf16.msra.mxu0 %v3805_v6  ;;  %1390 = vmatpush1.bf16.msra.mxu1 %v3806_v7  ;;  %v3821_v17 = vld [vmem:[#allocation5 + $0x8c] ss:$16 sps:$4 sm:$0xff]   ;;  %v3823_v18 = vld [vmem:[#allocation5 + $0x80] ss:$16 sps:$4 sm:$0xff]   ;;  %v3824_v19 = vld [vmem:[#allocation5 + $0x88] ss:$16 sps:$4 sm:$0xff]  }
  0x71   : > { %1165 = vmatprep.subr.bf16.mxu0 %v3807_v8  ;;  %1391 = vmatprep.subr.bf16.mxu1 %v3809_v9  ;;  %v3825_v20 = vld [vmem:[#allocation5 + $0xa4] ss:$16 sps:$4 sm:$0xff]   ;;  %v3827_v21 = vld [vmem:[#allocation5 + $0xac] ss:$16 sps:$4 sm:$0xff]   ;;  %v3829_v22 = vld [vmem:[#allocation5 + $0xa0] ss:$16 sps:$4 sm:$0xff]  }
  0x72   : > { %v3830_v23 = vld [vmem:[#allocation5 + $0xa8] ss:$16 sps:$4 sm:$0xff]   ;;  %v3831_v24 = vld [vmem:[#allocation5 + $0xc4] ss:$16 sps:$4 sm:$0xff]   ;;  %v3833_v25 = vld [vmem:[#allocation5 + $0xcc] ss:$16 sps:$4 sm:$0xff]  }
  0x73   : > { %v3835_v26 = vld [vmem:[#allocation5 + $0xc0] ss:$16 sps:$4 sm:$0xff]   ;;  %v3836_v27 = vld [vmem:[#allocation5 + $0xc8] ss:$16 sps:$4 sm:$0xff]   ;;  %v3837_v28 = vld [vmem:[#allocation5 + $0xe4] ss:$16 sps:$4 sm:$0xff]  }
  0x74   : > { %1166 = vmatpush1.bf16.msra.mxu0 %v3811_v10  ;;  %1392 = vmatpush1.bf16.msra.mxu1 %v3812_v11  ;;  %v3839_v29 = vld [vmem:[#allocation5 + $0xec] ss:$16 sps:$4 sm:$0xff]   ;;  %v3841_v30 = vld [vmem:[#allocation5 + $0xe0] ss:$16 sps:$4 sm:$0xff]   ;;  %v3842_v31 = vld [vmem:[#allocation5 + $0xe8] ss:$16 sps:$4 sm:$0xff]  }
  0x75   : > { %1167 = vmatprep.subr.bf16.mxu0 %v3813_v12  ;;  %1393 = vmatprep.subr.bf16.mxu1 %v3815_v13  ;;  %v3843_v32 = vld [vmem:[#allocation5 + $0x104] ss:$16 sps:$4 sm:$0xff]   ;;  %v3845_v33 = vld [vmem:[#allocation5 + $0x10c] ss:$16 sps:$4 sm:$0xff]   ;;  %v3847_v34 = vld [vmem:[#allocation5 + $0x100] ss:$16 sps:$4 sm:$0xff]  }
  0x76   : > { %v3848_v35 = vld [vmem:[#allocation5 + $0x108] ss:$16 sps:$4 sm:$0xff]   ;;  %v3849_v36 = vld [vmem:[#allocation5 + $0x124] ss:$16 sps:$4 sm:$0xff]   ;;  %v3851_v37 = vld [vmem:[#allocation5 + $0x12c] ss:$16 sps:$4 sm:$0xff]  }
  0x77   : > { %v3853_v38 = vld [vmem:[#allocation5 + $0x120] ss:$16 sps:$4 sm:$0xff]   ;;  %v3854_v39 = vld [vmem:[#allocation5 + $0x128] ss:$16 sps:$4 sm:$0xff]   ;;  %v3855_v40 = vld [vmem:[#allocation5 + $0x144] ss:$16 sps:$4 sm:$0xff]  }
  0x78   : > { %1168 = vmatpush1.bf16.msra.mxu0 %v3817_v14  ;;  %1394 = vmatpush1.bf16.msra.mxu1 %v3818_v15  ;;  %v3857_v41 = vld [vmem:[#allocation5 + $0x14c] ss:$16 sps:$4 sm:$0xff]   ;;  %v3859_v42 = vld [vmem:[#allocation5 + $0x140] ss:$16 sps:$4 sm:$0xff]   ;;  %v3860_v43 = vld [vmem:[#allocation5 + $0x148] ss:$16 sps:$4 sm:$0xff]  }
  0x79   : > { %1169 = vmatprep.subr.bf16.mxu0 %v3819_v16  ;;  %1395 = vmatprep.subr.bf16.mxu1 %v3821_v17  ;;  %v3861_v44 = vld [vmem:[#allocation5 + $0x164] ss:$16 sps:$4 sm:$0xff]   ;;  %v3863_v45 = vld [vmem:[#allocation5 + $0x16c] ss:$16 sps:$4 sm:$0xff]   ;;  %v3865_v47 = vld [vmem:[#allocation5 + $0x160] ss:$16 sps:$4 sm:$0xff]  }
  0x7a   : > { %v276_v46 = vld [vmem:[%s4555_s6 + $0x8] sm:$0xff]  ;;  %v3867_v50 = vld [vmem:[#allocation5 + $0x184] ss:$16 sps:$4 sm:$0xff]   ;;  %v3871_v53 = vld [vmem:[#allocation5 + $0x180] ss:$16 sps:$4 sm:$0xff]   ;;  %s4802_s11 = scalar_lea.vmem [#allocation8], %s3196_s17 }
  0x7b   : > { %v3866_v48 = vld [vmem:[#allocation5 + $0x168] ss:$16 sps:$4 sm:$0xff]   ;;  %v3869_v52 = vld [vmem:[#allocation5 + $0x18c] ss:$16 sps:$4 sm:$0xff]   ;;  %v3873_v55 = vld [vmem:[#allocation5 + $0x1a4] ss:$16 sps:$4 sm:$0xff]  }
  0x7c   : > { %1170 = vmatpush1.bf16.msra.mxu0 %v3823_v18  ;;  %1396 = vmatpush1.bf16.msra.mxu1 %v3824_v19  ;;  %v280_v49 = vld [vmem:[%s4555_s6 + $0x28] sm:$0xff]  ;;  %v3877_v57 = vld [vmem:[#allocation5 + $0x1a0] ss:$16 sps:$4 sm:$0xff]   ;;  %v3879_v59 = vld [vmem:[#allocation5 + $0x1c4] ss:$16 sps:$4 sm:$0xff]   ;;  %s3465_s28 = sshll.u32 %s4398_s22, 13 }
  0x7d   : > { %1171 = vmatprep.subr.bf16.mxu0 %v3825_v20  ;;  %1397 = vmatprep.subr.bf16.mxu1 %v3827_v21  ;;  %v340_v51 = vpack.c.bf16 %v280_v49, %v276_v46  ;;  %v3872_v54 = vld [vmem:[#allocation5 + $0x188] ss:$16 sps:$4 sm:$0xff]   ;;  %v3875_v56 = vld [vmem:[#allocation5 + $0x1ac] ss:$16 sps:$4 sm:$0xff]   ;;  %v3883_v61 = vld [vmem:[#allocation5 + $0x1c0] ss:$16 sps:$4 sm:$0xff]   ;;  %s4925_s16 = scalar_lea.hbm %s4981_s5, %s3465_s28 }
  0x7e   : > { %v3878_v58 = vld [vmem:[#allocation5 + $0x1a8] ss:$16 sps:$4 sm:$0xff]   ;;  %v3881_v60 = vld [vmem:[#allocation5 + $0x1cc] ss:$16 sps:$4 sm:$0xff]   ;;  %v3885_v63 = vld [vmem:[#allocation5 + $0x1e4] ss:$16 sps:$4 sm:$0xff]  }
  0x7f   : > { %1193 = vmatprep.mubr.bf16.mxu0 %v340_v51  ;;  %1419 = vmatprep.mubr.bf16.mxu1 %v340_v51  ;;  %v3884_v62 = vld [vmem:[#allocation5 + $0x1c8] ss:$16 sps:$4 sm:$0xff]   ;;  %v3887_v0 = vld [vmem:[#allocation5 + $0x1ec] ss:$16 sps:$4 sm:$0xff]   ;;  %v3889_v1 = vld [vmem:[#allocation5 + $0x1e0] ss:$16 sps:$4 sm:$0xff]  }
  0x80   : > { %1172 = vmatpush1.bf16.msra.mxu0 %v3829_v22  ;;  %1398 = vmatpush1.bf16.msra.mxu1 %v3830_v23  ;;  %v3890_v2 = vld [vmem:[#allocation5 + $0x1e8] ss:$16 sps:$4 sm:$0xff]   ;;  %v275_v3 = vld [vmem:[%s4555_s6] sm:$0xff]  ;;  %v3896_v6 = vld [vmem:[#allocation5 + $0x20c] ss:$16 sps:$4 sm:$0xff]   ;;  %s3094_s30 = sshll.u32 %s4802_s11, 4  ;;  %s4927_s30 = int_to_ptr.vmem [resolvable:$true] %s3094_s30 }
  0x81   : > { %1173 = vmatprep.subr.bf16.mxu0 %v3831_v24  ;;  %1399 = vmatprep.subr.bf16.mxu1 %v3833_v25  ;;  %v279_v4 = vld [vmem:[%s4555_s6 + $0x20] sm:$0xff]  ;;  %v3894_v9 = vld [vmem:[#allocation5 + $0x208] ss:$16 sps:$4 sm:$0xff]   ;;  %v3902_v13 = vld [vmem:[#allocation5 + $0x22c] ss:$16 sps:$4 sm:$0xff]   ;;  %s3080_s9 = scalar_lea.sflag [#allocation4], %s4549_s29 }
  0x82   : > { %v3893_v5 = vld [vmem:[#allocation5 + $0x204] ss:$16 sps:$4 sm:$0xff]   ;;  %v3891_v7 = vld [vmem:[#allocation5 + $0x200] ss:$16 sps:$4 sm:$0xff]   ;;  %v339_v8 = vpack.c.bf16 %v279_v4, %v275_v3  ;;  %v284_v10 = vld [vmem:[%s4555_s6 + $0x48] sm:$0xff]  ;;  %s4265_s12 = scalar_lea.vmem %s4927_s30, 8192 }
  0x83   : > { %v288_v11 = vld [vmem:[%s4555_s6 + $0x68] sm:$0xff]  ;;  %v3899_v12 = vld [vmem:[#allocation5 + $0x224] ss:$16 sps:$4 sm:$0xff]   ;;  %v3897_v14 = vld [vmem:[#allocation5 + $0x220] ss:$16 sps:$4 sm:$0xff]   ;;  %p4266_p11 = scmp.ne.s32.totalorder %s4927_s30, %s4265_s12  ;;  %p4995_p0 = scmp.ne.s32.totalorder %s4990_s23, 0 }
  0x84   : > { %1174 = vmatpush1.bf16.msra.mxu0 %v3835_v26  ;;  %1400 = vmatpush1.bf16.msra.mxu1 %v3836_v27  ;;  %v344_v15 = vpack.c.bf16 %v288_v11, %v284_v10  ;;  %v3900_v16 = vld [vmem:[#allocation5 + $0x228] ss:$16 sps:$4 sm:$0xff]   ;;  %v283_v17 = vld [vmem:[%s4555_s6 + $0x40] sm:$0xff]  ;;  %v3908_v20 = vld [vmem:[#allocation5 + $0x24c] ss:$16 sps:$4 sm:$0xff]   ;;  %s4344_s13 = smov [#allocation8]  }
  0x85   : > { %1175 = vmatprep.subr.bf16.mxu0 %v3837_v28  ;;  %1401 = vmatprep.subr.bf16.mxu1 %v3839_v29  ;;  %v287_v18 = vld [vmem:[%s4555_s6 + $0x60] sm:$0xff]  ;;  %v3906_v22 = vld [vmem:[#allocation5 + $0x248] ss:$16 sps:$4 sm:$0xff]   ;;  %v3914_v27 = vld [vmem:[#allocation5 + $0x26c] ss:$16 sps:$4 sm:$0xff]   ;;  %p4267_p1 = pnand %p4266_p11, %p4995_p0  ;;  %s4269_s17 = sshll.u32 %s4344_s13, 4  ;;  %s4270_s17 = int_to_ptr.vmem [resolvable:$false] %s4269_s17 }
  0x86   : > { %v3905_v19 = vld [vmem:[#allocation5 + $0x244] ss:$16 sps:$4 sm:$0xff]   ;;  %v3903_v21 = vld [vmem:[#allocation5 + $0x240] ss:$16 sps:$4 sm:$0xff]   ;;  %v343_v23 = vpack.c.bf16 %v287_v18, %v283_v17  ;;  %v292_v24 = vld [vmem:[%s4555_s6 + $0x88] sm:$0xff]  ;;  %s4271_s7 = scalar_lea.vmem %s4270_s17, 16384  ;;  %p4272_p7 = scmp.lt.s32.totalorder %s4927_s30, %s4270_s17 }
  0x87   : > { %v296_v25 = vld [vmem:[%s4555_s6 + $0xa8] sm:$0xff]  ;;  %v3911_v26 = vld [vmem:[#allocation5 + $0x264] ss:$16 sps:$4 sm:$0xff]   ;;  %v3909_v29 = vld [vmem:[#allocation5 + $0x260] ss:$16 sps:$4 sm:$0xff]   ;;  %p4268_p3 = pneg %p4267_p1  ;;  %p4273_p9 = scmp.lt.s32.totalorder %s4271_s7, %s4265_s12 }
  0x88   : > { %1176 = vmatpush1.bf16.msra.mxu0 %v3841_v30  ;;  %1402 = vmatpush1.bf16.msra.mxu1 %v3842_v31  ;;  %v348_v28 = vpack.c.bf16 %v296_v25, %v292_v24  ;;  %v3912_v30 = vld [vmem:[#allocation5 + $0x268] ss:$16 sps:$4 sm:$0xff]   ;;  %v291_v31 = vld [vmem:[%s4555_s6 + $0x80] sm:$0xff] }
  0x89   : > { %1177 = vmatprep.subr.bf16.mxu0 %v3843_v32  ;;  %1403 = vmatprep.subr.bf16.mxu1 %v3845_v33  ;;  %v295_v32 = vld [vmem:[%s4555_s6 + $0xa0] sm:$0xff]  ;;  %v308_v51 = vld [vmem:[%s4555_s6 + $0x108] sm:$0xff]  ;;  %p4274_p12 = por %p4273_p9, %p4272_p7 }
  0x8a   : > { %v3917_v33 = vld [vmem:[#allocation5 + $0x284] ss:$16 sps:$4 sm:$0xff]   ;;  %v3927_v49 = vld [vmem:[#allocation5 + $0x2c0] ss:$16 sps:$4 sm:$0xff]   ;;  %v3942_v3 = vld [vmem:[#allocation5 + $0x308] ss:$16 sps:$4 sm:$0xff]  }
  0x8b   : > { %v303_v46 = vld [vmem:[%s4555_s6 + $0xe0] sm:$0xff]  ;;  %v3954_v17 = vld [vmem:[#allocation5 + $0x348] ss:$16 sps:$4 sm:$0xff]   ;;  %p4275_p2 = pnand %p4274_p12, %p4268_p3 }
  0x8c   : > { %1178 = vmatpush1.bf16.msra.mxu0 %v3847_v34  ;;  %1404 = vmatpush1.bf16.msra.mxu1 %v3848_v35  ;;  %v3920_v34 = vld [vmem:[#allocation5 + $0x28c] ss:$16 sps:$4 sm:$0xff]   ;;  %v3915_v35 = vld [vmem:[#allocation5 + $0x280] ss:$16 sps:$4 sm:$0xff]   ;;  %v3947_v4 = vld [vmem:[#allocation5 + $0x324] ss:$16 sps:$4 sm:$0xff]  }
  0x8d   : > { %1179 = vmatprep.subr.bf16.mxu0 %v3849_v36  ;;  %1405 = vmatprep.subr.bf16.mxu1 %v3851_v37  ;;  %v3918_v36 = vld [vmem:[#allocation5 + $0x288] ss:$16 sps:$4 sm:$0xff]   ;;  %v347_v37 = vpack.c.bf16 %v295_v32, %v291_v31  ;;  %v319_v10 = vld [vmem:[%s4555_s6 + $0x160] sm:$0xff] }
  0x8e   : > { %v3953_v11 = vld [vmem:[#allocation5 + $0x344] ss:$16 sps:$4 sm:$0xff]   ;;  %v336_v31 = vld [vmem:[%s4555_s6 + $0x1e8] sm:$0xff] }
  0x8f   : > { %v3959_v18 = vld [vmem:[#allocation5 + $0x364] ss:$16 sps:$4 sm:$0xff]  }
  0x90   : > { %1180 = vmatpush1.bf16.msra.mxu0 %v3853_v38  ;;  %1406 = vmatpush1.bf16.msra.mxu1 %v3854_v39  ;;  %v300_v38 = vld [vmem:[%s4555_s6 + $0xc8] sm:$0xff]  ;;  %v327_v24 = vld [vmem:[%s4555_s6 + $0x1a0] sm:$0xff] }
  0x91   : > { %1181 = vmatprep.subr.bf16.mxu0 %v3855_v40  ;;  %1407 = vmatprep.subr.bf16.mxu1 %v3857_v41  ;;  %v304_v39 = vld [vmem:[%s4555_s6 + $0xe8] sm:$0xff]  ;;  %v3923_v40 = vld [vmem:[#allocation5 + $0x2a4] ss:$16 sps:$4 sm:$0xff]  }
  0x92   : > { %v3926_v41 = vld [vmem:[#allocation5 + $0x2ac] ss:$16 sps:$4 sm:$0xff]   ;;  %v3965_v25 = vld [vmem:[#allocation5 + $0x384] ss:$16 sps:$4 sm:$0xff]  }
  0x93   : > { %v3971_v32 = vld [vmem:[#allocation5 + $0x3a4] ss:$16 sps:$4 sm:$0xff]  }
  0x94   : > { %1182 = vmatpush1.bf16.msra.mxu0 %v3859_v42  ;;  %1408 = vmatpush1.bf16.msra.mxu1 %v3860_v43  ;;  %v3921_v42 = vld [vmem:[#allocation5 + $0x2a0] ss:$16 sps:$4 sm:$0xff]   ;;  %v352_v43 = vpack.c.bf16 %v304_v39, %v300_v38  ;;  %v3977_v39 = vld [vmem:[#allocation5 + $0x3c4] ss:$16 sps:$4 sm:$0xff]  }
  0x95   : > { %1183 = vmatprep.subr.bf16.mxu0 %v3861_v44  ;;  %1409 = vmatprep.subr.bf16.mxu1 %v3863_v45  ;;  %v3924_v44 = vld [vmem:[#allocation5 + $0x2a8] ss:$16 sps:$4 sm:$0xff]   ;;  %v299_v45 = vld [vmem:[%s4555_s6 + $0xc0] sm:$0xff] }
  0x96   : > { %v335_v38 = vld [vmem:[%s4555_s6 + $0x1e0] sm:$0xff] }
  0x98   : > { %1184 = vmatpush1.bf16.msra.mxu0 %v3865_v47  ;;  %1410 = vmatpush1.bf16.msra.mxu1 %v3866_v48  ;;  %v3929_v47 = vld [vmem:[#allocation5 + $0x2c4] ss:$16 sps:$4 sm:$0xff]   ;;  %v3932_v48 = vld [vmem:[#allocation5 + $0x2cc] ss:$16 sps:$4 sm:$0xff]  }
  0x99   : > { %1185 = vmatprep.subr.bf16.mxu0 %v3867_v50  ;;  %1411 = vmatprep.subr.bf16.mxu1 %v3869_v52  ;;  %v351_v50 = vpack.c.bf16 %v303_v46, %v299_v45  ;;  %v312_v52 = vld [vmem:[%s4555_s6 + $0x128] sm:$0xff]  ;;  %v282_v45 = vld [vmem:[%s4555_s6 + $0x38] sm:$0xff]  ;;  %v3983_v46 = vld [vmem:[#allocation5 + $0x3e4] ss:$16 sps:$4 sm:$0xff]  }
  0x9c   : > { %1186 = vmatpush1.bf16.msra.mxu0 %v3871_v53  ;;  %1412 = vmatpush1.bf16.msra.mxu1 %v3872_v54  ;;  %v3930_v53 = vld [vmem:[#allocation5 + $0x2c8] ss:$16 sps:$4 sm:$0xff]   ;;  %v3935_v54 = vld [vmem:[#allocation5 + $0x2e4] ss:$16 sps:$4 sm:$0xff]  }
  0x9d   : > { %1187 = vmatprep.subr.bf16.mxu0 %v3873_v55  ;;  %1413 = vmatprep.subr.bf16.mxu1 %v3875_v56  ;;  %v3938_v55 = vld [vmem:[#allocation5 + $0x2ec] ss:$16 sps:$4 sm:$0xff]   ;;  %v3933_v56 = vld [vmem:[#allocation5 + $0x2e0] ss:$16 sps:$4 sm:$0xff]  }
  0xa0   : > { %1188 = vmatpush1.bf16.msra.mxu0 %v3877_v57  ;;  %1414 = vmatpush1.bf16.msra.mxu1 %v3878_v58  ;;  %v3936_v57 = vld [vmem:[#allocation5 + $0x2e8] ss:$16 sps:$4 sm:$0xff]   ;;  %v356_v58 = vpack.c.bf16 %v312_v52, %v308_v51  ;;  %v277_v51 = vld [vmem:[%s4555_s6 + $0x10] sm:$0xff] }
  0xa1   : > { %1189 = vmatprep.subr.bf16.mxu0 %v3879_v59  ;;  %1415 = vmatprep.subr.bf16.mxu1 %v3881_v60  ;;  %v307_v59 = vld [vmem:[%s4555_s6 + $0x100] sm:$0xff]  ;;  %v281_v52 = vld [vmem:[%s4555_s6 + $0x30] sm:$0xff] }
  0xa2   : > { %v311_v60 = vld [vmem:[%s4555_s6 + $0x120] sm:$0xff] }
  0xa4   : > { %1190 = vmatpush1.bf16.msra.mxu0 %v3883_v61  ;;  %1416 = vmatpush1.bf16.msra.mxu1 %v3884_v62  ;;  %v3941_v61 = vld [vmem:[#allocation5 + $0x304] ss:$16 sps:$4 sm:$0xff]   ;;  %v3944_v62 = vld [vmem:[#allocation5 + $0x30c] ss:$16 sps:$4 sm:$0xff]  }
  0xa5   : > { %1191 = vmatprep.subr.bf16.mxu0 %v3885_v63  ;;  %1417 = vmatprep.subr.bf16.mxu1 %v3887_v0  ;;  %v355_v63 = vpack.c.bf16 %v311_v60, %v307_v59  ;;  %v316_v0 = vld [vmem:[%s4555_s6 + $0x148] sm:$0xff]  ;;  %v3987_v59 = vld [vmem:[#allocation7] ss:$16 sps:$4 sm:$0xff]  }
  0xa6   : > { %v3990_v60 = vld [vmem:[#allocation7 + $0x8] ss:$16 sps:$4 sm:$0xff]  }
  0xa8   : > { %1192 = vmatpush1.bf16.msra.mxu0 %v3889_v1  ;;  %1418 = vmatpush1.bf16.msra.mxu1 %v3890_v2  ;;  %v320_v1 = vld [vmem:[%s4555_s6 + $0x168] sm:$0xff]  ;;  %v3939_v2 = vld [vmem:[#allocation5 + $0x300] ss:$16 sps:$4 sm:$0xff]  }
  0xa9   : > { %1274 = vmatprep.subr.bf16.mxu0 %v3893_v5  ;;  %1500 = vmatprep.subr.bf16.mxu1 %v3896_v6  ;;  %v3950_v5 = vld [vmem:[#allocation5 + $0x32c] ss:$16 sps:$4 sm:$0xff]   ;;  %v360_v6 = vpack.c.bf16 %v320_v1, %v316_v0 }
  0xaa   : > { %v3998_v0 = vld [vmem:[#allocation7 + $0x2c] ss:$16 sps:$4 sm:$0xff]  }
  0xab   : > { %1194 = vmatmul.mubr.bf16.vlgmr.msra.gmra.mrb[0].mxu0 %v339_v8  ;;  %1420 = vmatmul.mubr.bf16.vlgmr.msra.gmra.mrb[0].mxu1 %v339_v8  ;;  %v3948_v8 = vld [vmem:[#allocation5 + $0x328] ss:$16 sps:$4 sm:$0xff]  }
  0xac   : > { %1275 = vmatpush1.bf16.msra.mxu0 %v3891_v7  ;;  %1501 = vmatpush1.bf16.msra.mxu1 %v3894_v9  ;;  %v3945_v7 = vld [vmem:[#allocation5 + $0x320] ss:$16 sps:$4 sm:$0xff]   ;;  %v294_v1 = vld [vmem:[%s4555_s6 + $0x98] sm:$0xff] }
  0xad   : > { %1276 = vmatprep.subr.bf16.mxu0 %v3899_v12  ;;  %1502 = vmatprep.subr.bf16.mxu1 %v3902_v13  ;;  %v315_v9 = vld [vmem:[%s4555_s6 + $0x140] sm:$0xff]  ;;  %v3956_v12 = vld [vmem:[#allocation5 + $0x34c] ss:$16 sps:$4 sm:$0xff]  }
  0xae   : > { %1203 = vmatprep.mubr.bf16.mxu0 %v344_v15  ;;  %1429 = vmatprep.mubr.bf16.mxu1 %v344_v15  ;;  %v359_v13 = vpack.c.bf16 %v319_v10, %v315_v9  ;;  %v328_v15 = vld [vmem:[%s4555_s6 + $0x1a8] sm:$0xff]  ;;  %v3999_v9 = vld [vmem:[#allocation7 + $0x40] ss:$16 sps:$4 sm:$0xff]  }
  0xaf   : > { %v4002_v10 = vld [vmem:[#allocation7 + $0x48] ss:$16 sps:$4 sm:$0xff]  }
  0xb0   : > { %1277 = vmatpush1.bf16.msra.mxu0 %v3897_v14  ;;  %1503 = vmatpush1.bf16.msra.mxu1 %v3900_v16  ;;  %v324_v14 = vld [vmem:[%s4555_s6 + $0x188] sm:$0xff]  ;;  %v3951_v16 = vld [vmem:[#allocation5 + $0x340] ss:$16 sps:$4 sm:$0xff]  }
  0xb1   : > { %1278 = vmatprep.subr.bf16.mxu0 %v3905_v19  ;;  %1504 = vmatprep.subr.bf16.mxu1 %v3908_v20  ;;  %v3962_v19 = vld [vmem:[#allocation5 + $0x36c] ss:$16 sps:$4 sm:$0xff]   ;;  %v3957_v20 = vld [vmem:[#allocation5 + $0x360] ss:$16 sps:$4 sm:$0xff]  }
  0xb3   : > { %1204 = vmatmul.mubr.bf16.gmra.mrb[4].mxu0 %v343_v23  ;;  %1430 = vmatmul.mubr.bf16.gmra.mrb[4].mxu1 %v343_v23  ;;  %v323_v23 = vld [vmem:[%s4555_s6 + $0x180] sm:$0xff] }
  0xb4   : > { %1279 = vmatpush1.bf16.msra.mxu0 %v3903_v21  ;;  %1505 = vmatpush1.bf16.msra.mxu1 %v3906_v22  ;;  %v3960_v21 = vld [vmem:[#allocation5 + $0x368] ss:$16 sps:$4 sm:$0xff]   ;;  %v364_v22 = vpack.c.bf16 %v328_v15, %v324_v14  ;;  %v4010_v14 = vld [vmem:[#allocation7 + $0x6c] ss:$16 sps:$4 sm:$0xff]  }
  0xb5   : > { %1280 = vmatprep.subr.bf16.mxu0 %v3911_v26  ;;  %1506 = vmatprep.subr.bf16.mxu1 %v3914_v27  ;;  %v3968_v26 = vld [vmem:[#allocation5 + $0x38c] ss:$16 sps:$4 sm:$0xff]   ;;  %v3963_v27 = vld [vmem:[#allocation5 + $0x380] ss:$16 sps:$4 sm:$0xff]  }
  0xb6   : > { %1213 = vmatprep.mubr.bf16.mxu0 %v348_v28  ;;  %1439 = vmatprep.mubr.bf16.mxu1 %v348_v28  ;;  %v3966_v28 = vld [vmem:[#allocation5 + $0x388] ss:$16 sps:$4 sm:$0xff]  }
  0xb7   : > { %v302_v15 = vld [vmem:[%s4555_s6 + $0xd8] sm:$0xff] }
  0xb8   : > { %1281 = vmatpush1.bf16.msra.mxu0 %v3909_v29  ;;  %1507 = vmatpush1.bf16.msra.mxu1 %v3912_v30  ;;  %v363_v29 = vpack.c.bf16 %v327_v24, %v323_v23  ;;  %v332_v30 = vld [vmem:[%s4555_s6 + $0x1c8] sm:$0xff] }
  0xb9   : > { %1282 = vmatprep.subr.bf16.mxu0 %v3917_v33  ;;  %1508 = vmatprep.subr.bf16.mxu1 %v3920_v34  ;;  %v3974_v33 = vld [vmem:[#allocation5 + $0x3ac] ss:$16 sps:$4 sm:$0xff]   ;;  %v3969_v34 = vld [vmem:[#allocation5 + $0x3a0] ss:$16 sps:$4 sm:$0xff]   ;;  %v4014_v23 = vld [vmem:[#allocation7 + $0x88] ss:$16 sps:$4 sm:$0xff]  }
  0xbb   : > { %1214 = vmatmul.mubr.bf16.gmra.mrb[8].mxu0 %v347_v37  ;;  %1440 = vmatmul.mubr.bf16.gmra.mrb[8].mxu1 %v347_v37  ;;  %v331_v37 = vld [vmem:[%s4555_s6 + $0x1c0] sm:$0xff] }
  0xbc   : > { %1283 = vmatpush1.bf16.msra.mxu0 %v3915_v35  ;;  %1509 = vmatpush1.bf16.msra.mxu1 %v3918_v36  ;;  %v3972_v35 = vld [vmem:[#allocation5 + $0x3a8] ss:$16 sps:$4 sm:$0xff]   ;;  %v368_v36 = vpack.c.bf16 %v336_v31, %v332_v30  ;;  %v4017_v31 = vld [vmem:[#allocation7 + $0xa0] ss:$16 sps:$4 sm:$0xff]  }
  0xbd   : > { %1284 = vmatprep.subr.bf16.mxu0 %v3923_v40  ;;  %1510 = vmatprep.subr.bf16.mxu1 %v3926_v41  ;;  %v3980_v40 = vld [vmem:[#allocation5 + $0x3cc] ss:$16 sps:$4 sm:$0xff]   ;;  %v3975_v41 = vld [vmem:[#allocation5 + $0x3c0] ss:$16 sps:$4 sm:$0xff]  }
  0xbe   : > { %1223 = vmatprep.mubr.bf16.mxu0 %v352_v43  ;;  %1449 = vmatprep.mubr.bf16.mxu1 %v352_v43  ;;  %v367_v43 = vpack.c.bf16 %v335_v38, %v331_v37  ;;  %v314_v30 = vld [vmem:[%s4555_s6 + $0x138] sm:$0xff] }
  0xbf   : > { %v4026_v37 = vld [vmem:[#allocation7 + $0xc8] ss:$16 sps:$4 sm:$0xff]  }
  0xc0   : > { %1285 = vmatpush1.bf16.msra.mxu0 %v3921_v42  ;;  %1511 = vmatpush1.bf16.msra.mxu1 %v3924_v44  ;;  %v3978_v42 = vld [vmem:[#allocation5 + $0x3c8] ss:$16 sps:$4 sm:$0xff]  }
  0xc1   : > { %1286 = vmatprep.subr.bf16.mxu0 %v3929_v47  ;;  %1512 = vmatprep.subr.bf16.mxu1 %v3932_v48  ;;  %v278_v44 = vld [vmem:[%s4555_s6 + $0x18] sm:$0xff]  ;;  %v3981_v48 = vld [vmem:[#allocation5 + $0x3e0] ss:$16 sps:$4 sm:$0xff]  }
  0xc2   : > { %v3986_v47 = vld [vmem:[#allocation5 + $0x3ec] ss:$16 sps:$4 sm:$0xff]  }
  0xc3   : > { %1224 = vmatmul.mubr.bf16.gmra.mrb[12].mxu0 %v351_v50  ;;  %1450 = vmatmul.mubr.bf16.gmra.mrb[12].mxu1 %v351_v50  ;;  %v342_v50 = vpack.c.bf16 %v282_v45, %v278_v44  ;;  %v322_v44 = vld [vmem:[%s4555_s6 + $0x178] sm:$0xff]  ;;  %v4029_v45 = vld [vmem:[#allocation7 + $0xe0] ss:$16 sps:$4 sm:$0xff]  }
  0xc4   : > { %1287 = vmatpush1.bf16.msra.mxu0 %v3927_v49  ;;  %1513 = vmatpush1.bf16.msra.mxu1 %v3930_v53  ;;  %v3984_v49 = vld [vmem:[#allocation5 + $0x3e8] ss:$16 sps:$4 sm:$0xff]  }
  0xc5   : > { %1288 = vmatprep.subr.bf16.mxu0 %v3935_v54  ;;  %1514 = vmatprep.subr.bf16.mxu1 %v3938_v55  ;;  %v286_v53 = vld [vmem:[%s4555_s6 + $0x58] sm:$0xff]  ;;  %v3989_v55 = vld [vmem:[#allocation7 + $0x4] ss:$16 sps:$4 sm:$0xff]  }
  0xc6   : > { %1233 = vmatprep.mubr.bf16.mxu0 %v356_v58  ;;  %1459 = vmatprep.mubr.bf16.mxu1 %v356_v58  ;;  %v290_v54 = vld [vmem:[%s4555_s6 + $0x78] sm:$0xff] }
  0xc7   : > { %v346_v58 = vpack.c.bf16 %v290_v54, %v286_v53  ;;  %v4043_v53 = vld [vmem:[#allocation7 + $0x124] ss:$16 sps:$4 sm:$0xff]   ;;  %v4046_v54 = vld [vmem:[#allocation7 + $0x12c] ss:$16 sps:$4 sm:$0xff]  }
  0xc8   : > { %1289 = vmatpush1.bf16.msra.mxu0 %v3933_v56  ;;  %1515 = vmatpush1.bf16.msra.mxu1 %v3936_v57  ;;  %v3992_v56 = vld [vmem:[#allocation7 + $0xc] ss:$16 sps:$4 sm:$0xff]   ;;  %v341_v57 = vpack.c.bf16 %v281_v52, %v277_v51  ;;  %v4038_v51 = vld [vmem:[#allocation7 + $0x108] ss:$16 sps:$4 sm:$0xff]  }
  0xc9   : > { %1290 = vmatprep.subr.bf16.mxu0 %v3941_v61  ;;  %1516 = vmatprep.subr.bf16.mxu1 %v3944_v62  ;;  %v285_v61 = vld [vmem:[%s4555_s6 + $0x50] sm:$0xff] }
  0xca   : > { %v289_v62 = vld [vmem:[%s4555_s6 + $0x70] sm:$0xff] }
  0xcb   : > { %1234 = vmatmul.mubr.bf16.gmra.mrb[16].mxu0 %v355_v63  ;;  %1460 = vmatmul.mubr.bf16.gmra.mrb[16].mxu1 %v355_v63  ;;  %v3995_v63 = vld [vmem:[#allocation7 + $0x24] ss:$16 sps:$4 sm:$0xff]  }
  0xcc   : > { %1291 = vmatpush1.bf16.msra.mxu0 %v3939_v2  ;;  %1517 = vmatpush1.bf16.msra.mxu1 %v3942_v3  ;;  %v298_v2 = vld [vmem:[%s4555_s6 + $0xb8] sm:$0xff]  ;;  %v3993_v3 = vld [vmem:[#allocation7 + $0x20] ss:$16 sps:$4 sm:$0xff]  }
  0xcd   : > { %1292 = vmatprep.subr.bf16.mxu0 %v3947_v4  ;;  %1518 = vmatprep.subr.bf16.mxu1 %v3950_v5  ;;  %v3996_v4 = vld [vmem:[#allocation7 + $0x28] ss:$16 sps:$4 sm:$0xff]   ;;  %v4001_v5 = vld [vmem:[#allocation7 + $0x44] ss:$16 sps:$4 sm:$0xff]  }
  0xce   : > { %1243 = vmatprep.mubr.bf16.mxu0 %v360_v6  ;;  %1469 = vmatprep.mubr.bf16.mxu1 %v360_v6  ;;  %v4004_v6 = vld [vmem:[#allocation7 + $0x4c] ss:$16 sps:$4 sm:$0xff]  }
  0xd0   : > { %1293 = vmatpush1.bf16.msra.mxu0 %v3945_v7  ;;  %1519 = vmatpush1.bf16.msra.mxu1 %v3948_v8  ;;  %v345_v7 = vpack.c.bf16 %v289_v62, %v285_v61  ;;  %v350_v8 = vpack.c.bf16 %v298_v2, %v294_v1  ;;  %v4049_v61 = vld [vmem:[#allocation7 + $0x144] ss:$16 sps:$4 sm:$0xff]   ;;  %v4052_v62 = vld [vmem:[#allocation7 + $0x14c] ss:$16 sps:$4 sm:$0xff]   ;;  %v4047_v1 = vld [vmem:[#allocation7 + $0x140] ss:$16 sps:$4 sm:$0xff]  }
  0xd1   : > { %1294 = vmatprep.subr.bf16.mxu0 %v3953_v11  ;;  %1520 = vmatprep.subr.bf16.mxu1 %v3956_v12  ;;  %v293_v11 = vld [vmem:[%s4555_s6 + $0x90] sm:$0xff]  ;;  %v4050_v2 = vld [vmem:[#allocation7 + $0x148] ss:$16 sps:$4 sm:$0xff]  }
  0xd2   : > { %v297_v12 = vld [vmem:[%s4555_s6 + $0xb0] sm:$0xff] }
  0xd3   : > { %1244 = vmatmul.mubr.bf16.gmra.mrb[20].mxu0 %v359_v13  ;;  %1470 = vmatmul.mubr.bf16.gmra.mrb[20].mxu1 %v359_v13  ;;  %v4007_v13 = vld [vmem:[#allocation7 + $0x64] ss:$16 sps:$4 sm:$0xff]  }
  0xd4   : > { %1295 = vmatpush1.bf16.msra.mxu0 %v3951_v16  ;;  %1521 = vmatpush1.bf16.msra.mxu1 %v3954_v17  ;;  %v306_v16 = vld [vmem:[%s4555_s6 + $0xf8] sm:$0xff]  ;;  %v4005_v17 = vld [vmem:[#allocation7 + $0x60] ss:$16 sps:$4 sm:$0xff]  }
  0xd5   : > { %1296 = vmatprep.subr.bf16.mxu0 %v3959_v18  ;;  %1522 = vmatprep.subr.bf16.mxu1 %v3962_v19  ;;  %v4008_v18 = vld [vmem:[#allocation7 + $0x68] ss:$16 sps:$4 sm:$0xff]   ;;  %v4013_v19 = vld [vmem:[#allocation7 + $0x84] ss:$16 sps:$4 sm:$0xff]   ;;  %v354_v24 = vpack.c.bf16 %v306_v16, %v302_v15  ;;  %v4059_v15 = vld [vmem:[#allocation7 + $0x180] ss:$16 sps:$4 sm:$0xff]  }
  0xd6   : > { %1253 = vmatprep.mubr.bf16.mxu0 %v364_v22  ;;  %1479 = vmatprep.mubr.bf16.mxu1 %v364_v22  ;;  %v4011_v22 = vld [vmem:[#allocation7 + $0x80] ss:$16 sps:$4 sm:$0xff]   ;;  %v4062_v16 = vld [vmem:[#allocation7 + $0x188] ss:$16 sps:$4 sm:$0xff]  }
  0xd8   : > { %1297 = vmatpush1.bf16.msra.mxu0 %v3957_v20  ;;  %1523 = vmatpush1.bf16.msra.mxu1 %v3960_v21  ;;  %v4016_v20 = vld [vmem:[#allocation7 + $0x8c] ss:$16 sps:$4 sm:$0xff]   ;;  %v349_v21 = vpack.c.bf16 %v297_v12, %v293_v11  ;;  %v4061_v11 = vld [vmem:[#allocation7 + $0x184] ss:$16 sps:$4 sm:$0xff]  }
  0xd9   : > { %1298 = vmatprep.subr.bf16.mxu0 %v3965_v25  ;;  %1524 = vmatprep.subr.bf16.mxu1 %v3968_v26  ;;  %v4019_v25 = vld [vmem:[#allocation7 + $0xa4] ss:$16 sps:$4 sm:$0xff]   ;;  %v4022_v26 = vld [vmem:[#allocation7 + $0xac] ss:$16 sps:$4 sm:$0xff]  }
  0xda   : > { %v4064_v12 = vld [vmem:[#allocation7 + $0x18c] ss:$16 sps:$4 sm:$0xff]  }
  0xdb   : > { %1254 = vmatmul.mubr.bf16.gmra.mrb[24].mxu0 %v363_v29  ;;  %1480 = vmatmul.mubr.bf16.gmra.mrb[24].mxu1 %v363_v29  ;;  %v310_v29 = vld [vmem:[%s4555_s6 + $0x118] sm:$0xff] }
  0xdc   : > { %1299 = vmatpush1.bf16.msra.mxu0 %v3963_v27  ;;  %1525 = vmatpush1.bf16.msra.mxu1 %v3966_v28  ;;  %v301_v27 = vld [vmem:[%s4555_s6 + $0xd0] sm:$0xff]  ;;  %v358_v38 = vpack.c.bf16 %v314_v30, %v310_v29  ;;  %v4082_v29 = vld [vmem:[#allocation7 + $0x1ec] ss:$16 sps:$4 sm:$0xff]  }
  0xdd   : > { %1300 = vmatprep.subr.bf16.mxu0 %v3971_v32  ;;  %1526 = vmatprep.subr.bf16.mxu1 %v3974_v33  ;;  %v305_v28 = vld [vmem:[%s4555_s6 + $0xf0] sm:$0xff]  ;;  %v4020_v32 = vld [vmem:[#allocation7 + $0xa8] ss:$16 sps:$4 sm:$0xff]  }
  0xde   : > { %1263 = vmatprep.mubr.bf16.mxu0 %v368_v36  ;;  %1489 = vmatprep.mubr.bf16.mxu1 %v368_v36  ;;  %v4025_v33 = vld [vmem:[#allocation7 + $0xc4] ss:$16 sps:$4 sm:$0xff]   ;;  %v4023_v36 = vld [vmem:[#allocation7 + $0xc0] ss:$16 sps:$4 sm:$0xff]  }
  0xdf   : > { %v4077_v30 = vld [vmem:[#allocation7 + $0x1e0] ss:$16 sps:$4 sm:$0xff]  }
  0xe0   : > { %1301 = vmatpush1.bf16.msra.mxu0 %v3969_v34  ;;  %1527 = vmatpush1.bf16.msra.mxu1 %v3972_v35  ;;  %v4028_v34 = vld [vmem:[#allocation7 + $0xcc] ss:$16 sps:$4 sm:$0xff]   ;;  %v353_v35 = vpack.c.bf16 %v305_v28, %v301_v27  ;;  %v4074_v27 = vld [vmem:[#allocation7 + $0x1c8] ss:$16 sps:$4 sm:$0xff]   ;;  %v4079_v28 = vld [vmem:[#allocation7 + $0x1e4] ss:$16 sps:$4 sm:$0xff]  }
  0xe1   : > { %1302 = vmatprep.subr.bf16.mxu0 %v3977_v39  ;;  %1528 = vmatprep.subr.bf16.mxu1 %v3980_v40  ;;  %v4031_v39 = vld [vmem:[#allocation7 + $0xe4] ss:$16 sps:$4 sm:$0xff]   ;;  %v4034_v40 = vld [vmem:[#allocation7 + $0xec] ss:$16 sps:$4 sm:$0xff]  }
  0xe3   : > { %1264 = vmatmul.mubr.bf16.gmra.mrb[28].mxu0 %v367_v43  ;;  %1490 = vmatmul.mubr.bf16.gmra.mrb[28].mxu1 %v367_v43  ;;  %v318_v43 = vld [vmem:[%s4555_s6 + $0x158] sm:$0xff] }
  0xe4   : > { %1303 = vmatpush1.bf16.msra.mxu0 %v3975_v41  ;;  %1529 = vmatpush1.bf16.msra.mxu1 %v3978_v42  ;;  %v309_v41 = vld [vmem:[%s4555_s6 + $0x110] sm:$0xff]  ;;  %v362_v52 = vpack.c.bf16 %v322_v44, %v318_v43 }
  0xe5   : > { %1304 = vmatprep.subr.bf16.mxu0 %v3983_v46  ;;  %1530 = vmatprep.subr.bf16.mxu1 %v3986_v47  ;;  %v313_v42 = vld [vmem:[%s4555_s6 + $0x130] sm:$0xff]  ;;  %v4032_v46 = vld [vmem:[#allocation7 + $0xe8] ss:$16 sps:$4 sm:$0xff]  }
  0xe6   : > { %1306 = vmatprep.mubr.bf16.mxu0 %v342_v50  ;;  %1532 = vmatprep.mubr.bf16.mxu1 %v342_v50  ;;  %v4037_v47 = vld [vmem:[#allocation7 + $0x104] ss:$16 sps:$4 sm:$0xff]   ;;  %v4035_v50 = vld [vmem:[#allocation7 + $0x100] ss:$16 sps:$4 sm:$0xff]  }
  0xe8   : > { %1305 = vmatpush1.bf16.msra.mxu0 %v3981_v48  ;;  %1531 = vmatpush1.bf16.msra.mxu1 %v3984_v49  ;;  %v4040_v48 = vld [vmem:[#allocation7 + $0x10c] ss:$16 sps:$4 sm:$0xff]   ;;  %v357_v49 = vpack.c.bf16 %v313_v42, %v309_v41 }
  0xe9   : > { %2499 = vmatprep.subr.bf16.mxu0 %v3989_v55  ;;  %2725 = vmatprep.subr.bf16.mxu1 %v3992_v56  ;;  %v317_v55 = vld [vmem:[%s4555_s6 + $0x150] sm:$0xff] }
  0xea   : > { %v321_v56 = vld [vmem:[%s4555_s6 + $0x170] sm:$0xff] }
  0xeb   : > { %1307 = vmatmul.mubr.bf16.vlgmr.msra.gmra.mrb[0].mxu0 %v341_v57  ;;  %1533 = vmatmul.mubr.bf16.vlgmr.msra.gmra.mrb[0].mxu1 %v341_v57  ;;  %v326_v57 = vld [vmem:[%s4555_s6 + $0x198] sm:$0xff] }
  0xec   : > { %1316 = vmatprep.mubr.bf16.mxu0 %v346_v58  ;;  %1542 = vmatprep.mubr.bf16.mxu1 %v346_v58  ;;  %v330_v58 = vld [vmem:[%s4555_s6 + $0x1b8] sm:$0xff] }
  0xed   : > { %2500 = vmatpush1.bf16.msra.mxu0 %v3987_v59  ;;  %2726 = vmatpush1.bf16.msra.mxu1 %v3990_v60  ;;  %v4041_v59 = vld [vmem:[#allocation7 + $0x120] ss:$16 sps:$4 sm:$0xff]   ;;  %v4044_v60 = vld [vmem:[#allocation7 + $0x128] ss:$16 sps:$4 sm:$0xff]  }
  0xee   : > { %2501 = vmatprep.subr.bf16.mxu0 %v3995_v63  ;;  %2727 = vmatprep.subr.bf16.mxu1 %v3998_v0  ;;  %v361_v63 = vpack.c.bf16 %v321_v56, %v317_v55  ;;  %v366_v0 = vpack.c.bf16 %v330_v58, %v326_v57 }
  0xf1   : > { %2502 = vmatpush1.bf16.msra.mxu0 %v3993_v3  ;;  %2728 = vmatpush1.bf16.msra.mxu1 %v3996_v4  ;;  %v4055_v3 = vld [vmem:[#allocation7 + $0x164] ss:$16 sps:$4 sm:$0xff]   ;;  %v4058_v4 = vld [vmem:[#allocation7 + $0x16c] ss:$16 sps:$4 sm:$0xff]  }
  0xf2   : > { %2503 = vmatprep.subr.bf16.mxu0 %v4001_v5  ;;  %2729 = vmatprep.subr.bf16.mxu1 %v4004_v6  ;;  %v325_v5 = vld [vmem:[%s4555_s6 + $0x190] sm:$0xff] }
  0xf3   : > { %1317 = vmatmul.mubr.bf16.gmra.mrb[4].mxu0 %v345_v7  ;;  %1543 = vmatmul.mubr.bf16.gmra.mrb[4].mxu1 %v345_v7  ;;  %v329_v6 = vld [vmem:[%s4555_s6 + $0x1b0] sm:$0xff]  ;;  %v334_v7 = vld [vmem:[%s4555_s6 + $0x1d8] sm:$0xff] }
  0xf4   : > { %1326 = vmatprep.mubr.bf16.mxu0 %v350_v8  ;;  %1552 = vmatprep.mubr.bf16.mxu1 %v350_v8  ;;  %v338_v8 = vld [vmem:[%s4555_s6 + $0x1f8] sm:$0xff] }
  0xf5   : > { %2504 = vmatpush1.bf16.msra.mxu0 %v3999_v9  ;;  %2730 = vmatpush1.bf16.msra.mxu1 %v4002_v10  ;;  %v4053_v9 = vld [vmem:[#allocation7 + $0x160] ss:$16 sps:$4 sm:$0xff]   ;;  %v4056_v10 = vld [vmem:[#allocation7 + $0x168] ss:$16 sps:$4 sm:$0xff]  }
  0xf6   : > { %2505 = vmatprep.subr.bf16.mxu0 %v4007_v13  ;;  %2731 = vmatprep.subr.bf16.mxu1 %v4010_v14  ;;  %v365_v13 = vpack.c.bf16 %v329_v6, %v325_v5  ;;  %v370_v14 = vpack.c.bf16 %v338_v8, %v334_v7 }
  0xf9   : > { %2506 = vmatpush1.bf16.msra.mxu0 %v4005_v17  ;;  %2732 = vmatpush1.bf16.msra.mxu1 %v4008_v18  ;;  %v4067_v17 = vld [vmem:[#allocation7 + $0x1a4] ss:$16 sps:$4 sm:$0xff]   ;;  %v4070_v18 = vld [vmem:[#allocation7 + $0x1ac] ss:$16 sps:$4 sm:$0xff]  }
  0xfa   : > { %2507 = vmatprep.subr.bf16.mxu0 %v4013_v19  ;;  %2733 = vmatprep.subr.bf16.mxu1 %v4016_v20  ;;  %v333_v19 = vld [vmem:[%s4555_s6 + $0x1d0] sm:$0xff] }
  0xfb   : > { %1327 = vmatmul.mubr.bf16.gmra.mrb[8].mxu0 %v349_v21  ;;  %1553 = vmatmul.mubr.bf16.gmra.mrb[8].mxu1 %v349_v21  ;;  %v337_v20 = vld [vmem:[%s4555_s6 + $0x1f0] sm:$0xff] }
  0xfc   : > { %1336 = vmatprep.mubr.bf16.mxu0 %v354_v24  ;;  %1562 = vmatprep.mubr.bf16.mxu1 %v354_v24  ;;  %v4065_v21 = vld [vmem:[#allocation7 + $0x1a0] ss:$16 sps:$4 sm:$0xff]   ;;  %v4073_v24 = vld [vmem:[#allocation7 + $0x1c4] ss:$16 sps:$4 sm:$0xff]  }
  0xfd   : > { %2508 = vmatpush1.bf16.msra.mxu0 %v4011_v22  ;;  %2734 = vmatpush1.bf16.msra.mxu1 %v4014_v23  ;;  %v4068_v22 = vld [vmem:[#allocation7 + $0x1a8] ss:$16 sps:$4 sm:$0xff]   ;;  %v369_v23 = vpack.c.bf16 %v337_v20, %v333_v19 }
  0xfe   : > { %2509 = vmatprep.subr.bf16.mxu0 %v4019_v25  ;;  %2735 = vmatprep.subr.bf16.mxu1 %v4022_v26  ;;  %v4076_v25 = vld [vmem:[#allocation7 + $0x1cc] ss:$16 sps:$4 sm:$0xff]   ;;  %v4071_v26 = vld [vmem:[#allocation7 + $0x1c0] ss:$16 sps:$4 sm:$0xff]  }
 0x101   : > { %2510 = vmatpush1.bf16.msra.mxu0 %v4017_v31  ;;  %2736 = vmatpush1.bf16.msra.mxu1 %v4020_v32  ;;  %v4080_v31 = vld [vmem:[#allocation7 + $0x1e8] ss:$16 sps:$4 sm:$0xff]   ;;  %v4085_v32 = vld [vmem:[#allocation7 + $0x204] ss:$16 sps:$4 sm:$0xff]  }
 0x102   : > { %2511 = vmatprep.subr.bf16.mxu0 %v4025_v33  ;;  %2737 = vmatprep.subr.bf16.mxu1 %v4028_v34  ;;  %v4088_v33 = vld [vmem:[#allocation7 + $0x20c] ss:$16 sps:$4 sm:$0xff]   ;;  %v501_v34 = vlaneseq }
 0x103   : > { %1337 = vmatmul.mubr.bf16.gmra.mrb[12].mxu0 %v353_v35  ;;  %1563 = vmatmul.mubr.bf16.gmra.mrb[12].mxu1 %v353_v35 }
 0x104   : > { %1346 = vmatprep.mubr.bf16.mxu0 %v358_v38  ;;  %1572 = vmatprep.mubr.bf16.mxu1 %v358_v38  ;;  %v4629_v35 = vshrl.u32 %v501_v34, 7  ;;  %v499_v38 = vld [vmem:[%s4978_s2] sm:$0xf] }
 0x105   : > { %2512 = vmatpush1.bf16.msra.mxu0 %v4023_v36  ;;  %2738 = vmatpush1.bf16.msra.mxu1 %v4026_v37 }
 0x106   : > { %2513 = vmatprep.subr.bf16.mxu0 %v4031_v39  ;;  %2739 = vmatprep.subr.bf16.mxu1 %v4034_v40  ;;  %v503_v36 = vsub.s32 0, %v4629_v35  ;;  %v511_v37 = vsub.s32 2, %v4629_v35  ;;  %v507_v39 = vsub.s32 1, %v4629_v35  ;;  %v515_v40 = vsub.s32 3, %v4629_v35 }
 0x108   : > { %v4640_v41 = vrot.slane %v499_v38, %v503_v36  ;;  %v4644_v42 = vrot.slane %v499_v38, %v511_v37  ;;  %v4648_v43 = vrot.slane %v499_v38, %v507_v39  ;;  %v4652_v44 = vrot.slane %v499_v38, %v515_v40 }
 0x109   : > { %2514 = vmatpush1.bf16.msra.mxu0 %v4029_v45  ;;  %2740 = vmatpush1.bf16.msra.mxu1 %v4032_v46 }
 0x10a   : > { %2515 = vmatprep.subr.bf16.mxu0 %v4037_v47  ;;  %2741 = vmatprep.subr.bf16.mxu1 %v4040_v48 }
 0x10b   : > { %1347 = vmatmul.mubr.bf16.gmra.mrb[16].mxu0 %v357_v49  ;;  %1573 = vmatmul.mubr.bf16.gmra.mrb[16].mxu1 %v357_v49 }
 0x10c   : > { %1356 = vmatprep.mubr.bf16.mxu0 %v362_v52  ;;  %1582 = vmatprep.mubr.bf16.mxu1 %v362_v52 }
 0x10d   : > { %2516 = vmatpush1.bf16.msra.mxu0 %v4035_v50  ;;  %2742 = vmatpush1.bf16.msra.mxu1 %v4038_v51 }
 0x10e   : > { %2517 = vmatprep.subr.bf16.mxu0 %v4043_v53  ;;  %2743 = vmatprep.subr.bf16.mxu1 %v4046_v54 }
 0x111   : > { %2518 = vmatpush1.bf16.msra.mxu0 %v4041_v59  ;;  %2744 = vmatpush1.bf16.msra.mxu1 %v4044_v60 }
 0x112   : > { %2519 = vmatprep.subr.bf16.mxu0 %v4049_v61  ;;  %2745 = vmatprep.subr.bf16.mxu1 %v4052_v62 }
 0x113   : > { %1357 = vmatmul.mubr.bf16.gmra.mrb[20].mxu0 %v361_v63  ;;  %1583 = vmatmul.mubr.bf16.gmra.mrb[20].mxu1 %v361_v63 }
 0x114   : > { %1366 = vmatprep.mubr.bf16.mxu0 %v366_v0  ;;  %1592 = vmatprep.mubr.bf16.mxu1 %v366_v0 }
 0x115   : > { %2520 = vmatpush1.bf16.msra.mxu0 %v4047_v1  ;;  %2746 = vmatpush1.bf16.msra.mxu1 %v4050_v2 }
 0x116   : > { %2521 = vmatprep.subr.bf16.mxu0 %v4055_v3  ;;  %2747 = vmatprep.subr.bf16.mxu1 %v4058_v4 }
 0x119   : > { %2522 = vmatpush1.bf16.msra.mxu0 %v4053_v9  ;;  %2748 = vmatpush1.bf16.msra.mxu1 %v4056_v10 }
 0x11a   : > { %2523 = vmatprep.subr.bf16.mxu0 %v4061_v11  ;;  %2749 = vmatprep.subr.bf16.mxu1 %v4064_v12  ;;  %v4083_v11 = vld [vmem:[#allocation7 + $0x200] ss:$16 sps:$4 sm:$0xff]   ;;  %v4086_v12 = vld [vmem:[#allocation7 + $0x208] ss:$16 sps:$4 sm:$0xff]  }
 0x11b   : > { %1367 = vmatmul.mubr.bf16.gmra.mrb[24].mxu0 %v365_v13  ;;  %1593 = vmatmul.mubr.bf16.gmra.mrb[24].mxu1 %v365_v13 }
 0x11c   : > { %1376 = vmatprep.mubr.bf16.mxu0 %v370_v14  ;;  %1602 = vmatprep.mubr.bf16.mxu1 %v370_v14 }
 0x11d   : > { %2524 = vmatpush1.bf16.msra.mxu0 %v4059_v15  ;;  %2750 = vmatpush1.bf16.msra.mxu1 %v4062_v16 }
 0x11e   : > { %2525 = vmatprep.subr.bf16.mxu0 %v4067_v17  ;;  %2751 = vmatprep.subr.bf16.mxu1 %v4070_v18  ;;  %v4091_v17 = vld [vmem:[#allocation7 + $0x224] ss:$16 sps:$4 sm:$0xff]   ;;  %v4094_v18 = vld [vmem:[#allocation7 + $0x22c] ss:$16 sps:$4 sm:$0xff]  }
 0x121   : > { %2526 = vmatpush1.bf16.msra.mxu0 %v4065_v21  ;;  %2752 = vmatpush1.bf16.msra.mxu1 %v4068_v22 }
 0x122   : > { %2527 = vmatprep.subr.bf16.mxu0 %v4073_v24  ;;  %2753 = vmatprep.subr.bf16.mxu1 %v4076_v25 }
 0x123   : > { %1377 = vmatmul.mubr.bf16.gmra.mrb[28].mxu0 %v369_v23  ;;  %1603 = vmatmul.mubr.bf16.gmra.mrb[28].mxu1 %v369_v23 }
 0x125   : > { %2528 = vmatpush1.bf16.msra.mxu0 %v4071_v26  ;;  %2754 = vmatpush1.bf16.msra.mxu1 %v4074_v27 }
 0x126   : > { %2529 = vmatprep.subr.bf16.mxu0 %v4079_v28  ;;  %2755 = vmatprep.subr.bf16.mxu1 %v4082_v29  ;;  %v4089_v29 = vld [vmem:[#allocation7 + $0x220] ss:$16 sps:$4 sm:$0xff]  }
 0x129   : > { %2530 = vmatpush1.bf16.msra.mxu0 %v4077_v30  ;;  %2756 = vmatpush1.bf16.msra.mxu1 %v4080_v31  ;;  %v4092_v30 = vld [vmem:[#allocation7 + $0x228] ss:$16 sps:$4 sm:$0xff]   ;;  %v4097_v31 = vld [vmem:[#allocation7 + $0x244] ss:$16 sps:$4 sm:$0xff]  }
 0x12a   : > { %2612 = vmatprep.subr.bf16.mxu0 %v4085_v32  ;;  %2838 = vmatprep.subr.bf16.mxu1 %v4088_v33 }
 0x1be   : > { %v1308_v45 = vpop.f32.mrb[0].mxu0  ;;  %v1534_v46 = vpop.f32.mrb[0].mxu1 }
 0x1bf   : > { %v3466_v47 = vadd.f32 %v1308_v45, %v4640_v41  ;;  %v3498_v48 = vadd.f32 %v1534_v46, %v4644_v42  ;;  %v1310_v49 = vpop.f32.mrb[1].mxu0  ;;  %v1536_v50 = vpop.f32.mrb[1].mxu1  ;;  %v4100_v45 = vld [vmem:[#allocation7 + $0x24c] ss:$16 sps:$4 sm:$0xff]  }
 0x1c0   : > { %v3467_v51 = vadd.f32 %v1310_v49, %v4648_v43  ;;  %v3499_v52 = vadd.f32 %v1536_v50, %v4652_v44  ;;  %v1312_v53 = vpop.f32.mrb[2].mxu0  ;;  %v1538_v54 = vpop.f32.mrb[2].mxu1 }
 0x1c1   : > { %v3468_v55 = vadd.f32 %v1312_v53, %v4640_v41  ;;  %v3500_v56 = vadd.f32 %v1538_v54, %v4644_v42  ;;  %v1314_v57 = vpop.f32.mrb[3].mxu0  ;;  %v1540_v58 = vpop.f32.mrb[3].mxu1  ;;  %v1613_v61 = vmax.f32 %v3466_v47, 0.0  ;;  %v1615_v62 = vmax.f32 %v3498_v48, 0.0 }
 0x1c2   : > { %v3469_v59 = vadd.f32 %v1314_v57, %v4648_v43  ;;  %v3501_v60 = vadd.f32 %v1540_v58, %v4652_v44  ;;  %v1614_v1 = vmax.f32 %v3467_v51, 0.0  ;;  %v1616_v2 = vmax.f32 %v3499_v52, 0.0  ;;  %v4098_v57 = vld [vmem:[#allocation7 + $0x248] ss:$16 sps:$4 sm:$0xff]  }
 0x1c3   : > { %v1617_v63 = vmax.f32 %v3468_v55, 0.0  ;;  %v1619_v0 = vmax.f32 %v3500_v56, 0.0  ;;  %v4095_v56 = vld [vmem:[#allocation7 + $0x240] ss:$16 sps:$4 sm:$0xff]  }
 0x1c4   : > { %v1618_v3 = vmax.f32 %v3469_v59, 0.0  ;;  %v1620_v4 = vmax.f32 %v3501_v60, 0.0 }
 0x1c5   : > { %v1677_v5 = vpack.c.bf16 %v1617_v63, %v1613_v61  ;;  %v4662_v6 = vpack.c.bf16 %v1619_v0, %v1615_v62  ;;  %v4103_v62 = vld [vmem:[#allocation7 + $0x264] ss:$16 sps:$4 sm:$0xff]   ;;  %v4106_v63 = vld [vmem:[#allocation7 + $0x26c] ss:$16 sps:$4 sm:$0xff]  }
 0x1c6   : > { %v1678_v7 = vpack.c.bf16 %v1618_v3, %v1614_v1  ;;  %v4664_v8 = vpack.c.bf16 %v1620_v4, %v1616_v2  ;;  %v1318_v9 = vpop.f32.mrb[4].mxu0  ;;  %v1544_v10 = vpop.f32.mrb[4].mxu1 }
 0x1c7   : > { %v3470_v13 = vadd.f32 %v1318_v9, %v4640_v41  ;;  %v3502_v14 = vadd.f32 %v1544_v10, %v4644_v42  ;;  %v1320_v15 = vpop.f32.mrb[5].mxu0  ;;  %v1546_v16 = vpop.f32.mrb[5].mxu1 }
 0x1c8   : > { %v3471_v19 = vadd.f32 %v1320_v15, %v4648_v43  ;;  %v3503_v20 = vadd.f32 %v1546_v16, %v4652_v44  ;;  %v1322_v21 = vpop.f32.mrb[6].mxu0  ;;  %v1548_v22 = vpop.f32.mrb[6].mxu1  ;;  %2531 = vmatprep.mubr.bf16.mxu0 %v1678_v7  ;;  %2757 = vmatprep.mubr.bf16.mxu1 %v1678_v7 }
 0x1c9   : > { %v3472_v23 = vadd.f32 %v1322_v21, %v4640_v41  ;;  %v3504_v24 = vadd.f32 %v1548_v22, %v4644_v42  ;;  %v1324_v25 = vpop.f32.mrb[7].mxu0  ;;  %v1550_v26 = vpop.f32.mrb[7].mxu1  ;;  %2532 = vmatmul.mubr.bf16.vlgmr.msra.gmra.mrb[32].mxu0 %v1677_v5  ;;  %2758 = vmatmul.mubr.bf16.vlgmr.msra.gmra.mrb[32].mxu1 %v1677_v5  ;;  %v1621_v32 = vmax.f32 %v3470_v13, 0.0  ;;  %v1623_v33 = vmax.f32 %v3502_v14, 0.0  ;;  %v4104_v13 = vld [vmem:[#allocation7 + $0x268] ss:$16 sps:$4 sm:$0xff]  }
 0x1ca   : > { %v3473_v27 = vadd.f32 %v1324_v25, %v4648_v43  ;;  %v3505_v28 = vadd.f32 %v1550_v26, %v4652_v44  ;;  %2613 = vmatpush1.bf16.msra.mxu0 %v4083_v11  ;;  %2839 = vmatpush1.bf16.msra.mxu1 %v4086_v12  ;;  %v1622_v46 = vmax.f32 %v3471_v19, 0.0  ;;  %v1624_v47 = vmax.f32 %v3503_v20, 0.0  ;;  %v4101_v12 = vld [vmem:[#allocation7 + $0x260] ss:$16 sps:$4 sm:$0xff]   ;;  %v4109_v14 = vld [vmem:[#allocation7 + $0x284] ss:$16 sps:$4 sm:$0xff]  }
 0x1cb   : > { %v1625_v34 = vmax.f32 %v3472_v23, 0.0  ;;  %v1627_v38 = vmax.f32 %v3504_v24, 0.0  ;;  %2614 = vmatprep.subr.bf16.mxu0 %v4091_v17  ;;  %2840 = vmatprep.subr.bf16.mxu1 %v4094_v18  ;;  %v4112_v19 = vld [vmem:[#allocation7 + $0x28c] ss:$16 sps:$4 sm:$0xff]  }
 0x1cc   : > { %v1626_v48 = vmax.f32 %v3473_v27, 0.0  ;;  %v1628_v49 = vmax.f32 %v3505_v28, 0.0 }
 0x1cd   : > { %v1681_v50 = vpack.c.bf16 %v1625_v34, %v1621_v32  ;;  %v4674_v51 = vpack.c.bf16 %v1627_v38, %v1623_v33 }
 0x1ce   : > { %v1682_v52 = vpack.c.bf16 %v1626_v48, %v1622_v46  ;;  %v4676_v53 = vpack.c.bf16 %v1628_v49, %v1624_v47  ;;  %v1328_v54 = vpop.f32.mrb[8].mxu0  ;;  %v1554_v55 = vpop.f32.mrb[8].mxu1  ;;  %2615 = vmatpush1.bf16.msra.mxu0 %v4089_v29  ;;  %2841 = vmatpush1.bf16.msra.mxu1 %v4092_v30  ;;  %v4107_v30 = vld [vmem:[#allocation7 + $0x280] ss:$16 sps:$4 sm:$0xff]   ;;  %v4118_v46 = vld [vmem:[#allocation7 + $0x2ac] ss:$16 sps:$4 sm:$0xff]  }
 0x1cf   : > { %v3474_v58 = vadd.f32 %v1328_v54, %v4640_v41  ;;  %v3506_v59 = vadd.f32 %v1554_v55, %v4644_v42  ;;  %v1330_v60 = vpop.f32.mrb[9].mxu0  ;;  %v1556_v61 = vpop.f32.mrb[9].mxu1  ;;  %2616 = vmatprep.subr.bf16.mxu0 %v4097_v31  ;;  %2842 = vmatprep.subr.bf16.mxu1 %v4100_v45  ;;  %v4110_v31 = vld [vmem:[#allocation7 + $0x288] ss:$16 sps:$4 sm:$0xff]   ;;  %v4115_v45 = vld [vmem:[#allocation7 + $0x2a4] ss:$16 sps:$4 sm:$0xff]  }
 0x1d0   : > { %v3475_v0 = vadd.f32 %v1330_v60, %v4648_v43  ;;  %v3507_v1 = vadd.f32 %v1556_v61, %v4652_v44  ;;  %v1332_v2 = vpop.f32.mrb[10].mxu0  ;;  %v1558_v3 = vpop.f32.mrb[10].mxu1  ;;  %2541 = vmatprep.mubr.bf16.mxu0 %v1682_v52  ;;  %2767 = vmatprep.mubr.bf16.mxu1 %v1682_v52  ;;  %v4116_v60 = vld [vmem:[#allocation7 + $0x2a8] ss:$16 sps:$4 sm:$0xff]   ;;  %v4121_v61 = vld [vmem:[#allocation7 + $0x2c4] ss:$16 sps:$4 sm:$0xff]  }
 0x1d1   : > { %v3476_v4 = vadd.f32 %v1332_v2, %v4640_v41  ;;  %v3508_v5 = vadd.f32 %v1558_v3, %v4644_v42  ;;  %v1334_v7 = vpop.f32.mrb[11].mxu0  ;;  %v1560_v9 = vpop.f32.mrb[11].mxu1  ;;  %2542 = vmatmul.mubr.bf16.gmra.mrb[36].mxu0 %v1681_v50  ;;  %2768 = vmatmul.mubr.bf16.gmra.mrb[36].mxu1 %v1681_v50  ;;  %v1629_v15 = vmax.f32 %v3474_v58, 0.0  ;;  %v1631_v16 = vmax.f32 %v3506_v59, 0.0  ;;  %v4113_v59 = vld [vmem:[#allocation7 + $0x2a0] ss:$16 sps:$4 sm:$0xff]  }
 0x1d2   : > { %v3477_v10 = vadd.f32 %v1334_v7, %v4648_v43  ;;  %v3509_v11 = vadd.f32 %v1560_v9, %v4652_v44  ;;  %2617 = vmatpush1.bf16.msra.mxu0 %v4095_v56  ;;  %2843 = vmatpush1.bf16.msra.mxu1 %v4098_v57  ;;  %v1630_v20 = vmax.f32 %v3475_v0, 0.0  ;;  %v1632_v21 = vmax.f32 %v3507_v1, 0.0  ;;  %v4124_v2 = vld [vmem:[#allocation7 + $0x2cc] ss:$16 sps:$4 sm:$0xff]  }
 0x1d3   : > { %v1633_v17 = vmax.f32 %v3476_v4, 0.0  ;;  %v1635_v18 = vmax.f32 %v3508_v5, 0.0  ;;  %2618 = vmatprep.subr.bf16.mxu0 %v4103_v62  ;;  %2844 = vmatprep.subr.bf16.mxu1 %v4106_v63 }
 0x1d4   : > { %v1634_v22 = vmax.f32 %v3477_v10, 0.0  ;;  %v1636_v23 = vmax.f32 %v3509_v11, 0.0 }
 0x1d5   : > { %v1685_v24 = vpack.c.bf16 %v1633_v17, %v1629_v15  ;;  %v4686_v25 = vpack.c.bf16 %v1635_v18, %v1631_v16  ;;  %v4119_v15 = vld [vmem:[#allocation7 + $0x2c0] ss:$16 sps:$4 sm:$0xff]   ;;  %v4122_v16 = vld [vmem:[#allocation7 + $0x2c8] ss:$16 sps:$4 sm:$0xff]  }
 0x1d6   : > { %v1686_v26 = vpack.c.bf16 %v1634_v22, %v1630_v20  ;;  %v4688_v27 = vpack.c.bf16 %v1636_v23, %v1632_v21  ;;  %v1338_v28 = vpop.f32.mrb[12].mxu0  ;;  %v1564_v29 = vpop.f32.mrb[12].mxu1  ;;  %2619 = vmatpush1.bf16.msra.mxu0 %v4101_v12  ;;  %2845 = vmatpush1.bf16.msra.mxu1 %v4104_v13  ;;  %v4127_v21 = vld [vmem:[#allocation7 + $0x2e4] ss:$16 sps:$4 sm:$0xff]   ;;  %v4130_v22 = vld [vmem:[#allocation7 + $0x2ec] ss:$16 sps:$4 sm:$0xff]  }
 0x1d7   : > { %v3478_v32 = vadd.f32 %v1338_v28, %v4640_v41  ;;  %v3510_v33 = vadd.f32 %v1564_v29, %v4644_v42  ;;  %v1340_v34 = vpop.f32.mrb[13].mxu0  ;;  %v1566_v38 = vpop.f32.mrb[13].mxu1  ;;  %2620 = vmatprep.subr.bf16.mxu0 %v4109_v14  ;;  %2846 = vmatprep.subr.bf16.mxu1 %v4112_v19 }
 0x1d8   : > { %v3479_v47 = vadd.f32 %v1340_v34, %v4648_v43  ;;  %v3511_v48 = vadd.f32 %v1566_v38, %v4652_v44  ;;  %v1342_v49 = vpop.f32.mrb[14].mxu0  ;;  %v1568_v50 = vpop.f32.mrb[14].mxu1  ;;  %2551 = vmatprep.mubr.bf16.mxu0 %v1686_v26  ;;  %2777 = vmatprep.mubr.bf16.mxu1 %v1686_v26  ;;  %v4125_v38 = vld [vmem:[#allocation7 + $0x2e0] ss:$16 sps:$4 sm:$0xff]  }
 0x1d9   : > { %v3480_v52 = vadd.f32 %v1342_v49, %v4640_v41  ;;  %v3512_v54 = vadd.f32 %v1568_v50, %v4644_v42  ;;  %v1344_v55 = vpop.f32.mrb[15].mxu0  ;;  %v1570_v56 = vpop.f32.mrb[15].mxu1  ;;  %2552 = vmatmul.mubr.bf16.gmra.mrb[40].mxu0 %v1685_v24  ;;  %2778 = vmatmul.mubr.bf16.gmra.mrb[40].mxu1 %v1685_v24  ;;  %v1637_v62 = vmax.f32 %v3478_v32, 0.0  ;;  %v1639_v63 = vmax.f32 %v3510_v33, 0.0 }
 0x1da   : > { %v3481_v57 = vadd.f32 %v1344_v55, %v4648_v43  ;;  %v3513_v58 = vadd.f32 %v1570_v56, %v4652_v44  ;;  %2621 = vmatpush1.bf16.msra.mxu0 %v4107_v30  ;;  %2847 = vmatpush1.bf16.msra.mxu1 %v4110_v31  ;;  %v1638_v3 = vmax.f32 %v3479_v47, 0.0  ;;  %v1640_v4 = vmax.f32 %v3511_v48, 0.0 }
 0x1db   : > { %v1641_v0 = vmax.f32 %v3480_v52, 0.0  ;;  %v1643_v1 = vmax.f32 %v3512_v54, 0.0  ;;  %2622 = vmatprep.subr.bf16.mxu0 %v4115_v45  ;;  %2848 = vmatprep.subr.bf16.mxu1 %v4118_v46  ;;  %v4128_v45 = vld [vmem:[#allocation7 + $0x2e8] ss:$16 sps:$4 sm:$0xff]   ;;  %v4133_v46 = vld [vmem:[#allocation7 + $0x304] ss:$16 sps:$4 sm:$0xff]  }
 0x1dc   : > { %v1642_v5 = vmax.f32 %v3481_v57, 0.0  ;;  %v1644_v7 = vmax.f32 %v3513_v58, 0.0  ;;  %v4136_v52 = vld [vmem:[#allocation7 + $0x30c] ss:$16 sps:$4 sm:$0xff]  }
 0x1dd   : > { %v1689_v9 = vpack.c.bf16 %v1641_v0, %v1637_v62  ;;  %v4698_v10 = vpack.c.bf16 %v1643_v1, %v1639_v63  ;;  %v4131_v0 = vld [vmem:[#allocation7 + $0x300] ss:$16 sps:$4 sm:$0xff]   ;;  %v4134_v1 = vld [vmem:[#allocation7 + $0x308] ss:$16 sps:$4 sm:$0xff]  }
 0x1de   : > { %v1690_v11 = vpack.c.bf16 %v1642_v5, %v1638_v3  ;;  %v4700_v12 = vpack.c.bf16 %v1644_v7, %v1640_v4  ;;  %v1348_v13 = vpop.f32.mrb[16].mxu0  ;;  %v1574_v14 = vpop.f32.mrb[16].mxu1  ;;  %2623 = vmatpush1.bf16.msra.mxu0 %v4113_v59  ;;  %2849 = vmatpush1.bf16.msra.mxu1 %v4116_v60  ;;  %v4139_v7 = vld [vmem:[#allocation7 + $0x324] ss:$16 sps:$4 sm:$0xff]  }
 0x1df   : > { %v3482_v17 = vadd.f32 %v1348_v13, %v4640_v41  ;;  %v3514_v18 = vadd.f32 %v1574_v14, %v4644_v42  ;;  %v1350_v19 = vpop.f32.mrb[17].mxu0  ;;  %v1576_v20 = vpop.f32.mrb[17].mxu1  ;;  %2624 = vmatprep.subr.bf16.mxu0 %v4121_v61  ;;  %2850 = vmatprep.subr.bf16.mxu1 %v4124_v2 }
 0x1e0   : > { %v3483_v23 = vadd.f32 %v1350_v19, %v4648_v43  ;;  %v3515_v24 = vadd.f32 %v1576_v20, %v4652_v44  ;;  %v1352_v26 = vpop.f32.mrb[18].mxu0  ;;  %v1578_v28 = vpop.f32.mrb[18].mxu1  ;;  %2561 = vmatprep.mubr.bf16.mxu0 %v1690_v11  ;;  %2787 = vmatprep.mubr.bf16.mxu1 %v1690_v11 }
 0x1e1   : > { %v3484_v29 = vadd.f32 %v1352_v26, %v4640_v41  ;;  %v3516_v30 = vadd.f32 %v1578_v28, %v4644_v42  ;;  %v1354_v31 = vpop.f32.mrb[19].mxu0  ;;  %v1580_v32 = vpop.f32.mrb[19].mxu1  ;;  %2562 = vmatmul.mubr.bf16.gmra.mrb[44].mxu0 %v1689_v9  ;;  %2788 = vmatmul.mubr.bf16.gmra.mrb[44].mxu1 %v1689_v9  ;;  %v1645_v47 = vmax.f32 %v3482_v17, 0.0  ;;  %v1647_v48 = vmax.f32 %v3514_v18, 0.0  ;;  %v4142_v9 = vld [vmem:[#allocation7 + $0x32c] ss:$16 sps:$4 sm:$0xff]  }
 0x1e2   : > { %v3485_v33 = vadd.f32 %v1354_v31, %v4648_v43  ;;  %v3517_v34 = vadd.f32 %v1580_v32, %v4652_v44  ;;  %2625 = vmatpush1.bf16.msra.mxu0 %v4119_v15  ;;  %2851 = vmatpush1.bf16.msra.mxu1 %v4122_v16  ;;  %v1646_v54 = vmax.f32 %v3483_v23, 0.0  ;;  %v1648_v55 = vmax.f32 %v3515_v24, 0.0  ;;  %v4140_v23 = vld [vmem:[#allocation7 + $0x328] ss:$16 sps:$4 sm:$0xff]   ;;  %v4145_v24 = vld [vmem:[#allocation7 + $0x344] ss:$16 sps:$4 sm:$0xff]  }
 0x1e3   : > { %v1649_v49 = vmax.f32 %v3484_v29, 0.0  ;;  %v1651_v50 = vmax.f32 %v3516_v30, 0.0  ;;  %2626 = vmatprep.subr.bf16.mxu0 %v4127_v21  ;;  %2852 = vmatprep.subr.bf16.mxu1 %v4130_v22  ;;  %v4137_v22 = vld [vmem:[#allocation7 + $0x320] ss:$16 sps:$4 sm:$0xff]   ;;  %v4148_v31 = vld [vmem:[#allocation7 + $0x34c] ss:$16 sps:$4 sm:$0xff]  }
 0x1e4   : > { %v1650_v56 = vmax.f32 %v3485_v33, 0.0  ;;  %v1652_v57 = vmax.f32 %v3517_v34, 0.0 }
 0x1e5   : > { %v1693_v58 = vpack.c.bf16 %v1649_v49, %v1645_v47  ;;  %v4710_v59 = vpack.c.bf16 %v1651_v50, %v1647_v48 }
 0x1e6   : > { %v1694_v60 = vpack.c.bf16 %v1650_v56, %v1646_v54  ;;  %v4712_v61 = vpack.c.bf16 %v1652_v57, %v1648_v55  ;;  %v1358_v62 = vpop.f32.mrb[20].mxu0  ;;  %v1584_v63 = vpop.f32.mrb[20].mxu1  ;;  %2627 = vmatpush1.bf16.msra.mxu0 %v4125_v38  ;;  %2853 = vmatpush1.bf16.msra.mxu1 %v4128_v45  ;;  %v4146_v54 = vld [vmem:[#allocation7 + $0x348] ss:$16 sps:$4 sm:$0xff]  }
 0x1e7   : > { %v3486_v2 = vadd.f32 %v1358_v62, %v4640_v41  ;;  %v3518_v3 = vadd.f32 %v1584_v63, %v4644_v42  ;;  %v1360_v4 = vpop.f32.mrb[21].mxu0  ;;  %v1586_v5 = vpop.f32.mrb[21].mxu1  ;;  %2628 = vmatprep.subr.bf16.mxu0 %v4133_v46  ;;  %2854 = vmatprep.subr.bf16.mxu1 %v4136_v52  ;;  %v4143_v52 = vld [vmem:[#allocation7 + $0x340] ss:$16 sps:$4 sm:$0xff]   ;;  %v4154_v62 = vld [vmem:[#allocation7 + $0x36c] ss:$16 sps:$4 sm:$0xff]  }
 0x1e8   : > { %v3487_v11 = vadd.f32 %v1360_v4, %v4648_v43  ;;  %v3519_v13 = vadd.f32 %v1586_v5, %v4652_v44  ;;  %v1362_v14 = vpop.f32.mrb[22].mxu0  ;;  %v1588_v15 = vpop.f32.mrb[22].mxu1  ;;  %2571 = vmatprep.mubr.bf16.mxu0 %v1694_v60  ;;  %2797 = vmatprep.mubr.bf16.mxu1 %v1694_v60  ;;  %v4151_v60 = vld [vmem:[#allocation7 + $0x364] ss:$16 sps:$4 sm:$0xff]  }
 0x1e9   : > { %v3488_v16 = vadd.f32 %v1362_v14, %v4640_v41  ;;  %v3520_v17 = vadd.f32 %v1588_v15, %v4644_v42  ;;  %v1364_v18 = vpop.f32.mrb[23].mxu0  ;;  %v1590_v19 = vpop.f32.mrb[23].mxu1  ;;  %2572 = vmatmul.mubr.bf16.gmra.mrb[48].mxu0 %v1693_v58  ;;  %2798 = vmatmul.mubr.bf16.gmra.mrb[48].mxu1 %v1693_v58  ;;  %v1653_v26 = vmax.f32 %v3486_v2, 0.0  ;;  %v1655_v28 = vmax.f32 %v3518_v3, 0.0  ;;  %v4152_v14 = vld [vmem:[#allocation7 + $0x368] ss:$16 sps:$4 sm:$0xff]  }
 0x1ea   : > { %v3489_v20 = vadd.f32 %v1364_v18, %v4648_v43  ;;  %v3521_v21 = vadd.f32 %v1590_v19, %v4652_v44  ;;  %2629 = vmatpush1.bf16.msra.mxu0 %v4131_v0  ;;  %2855 = vmatpush1.bf16.msra.mxu1 %v4134_v1  ;;  %v1654_v32 = vmax.f32 %v3487_v11, 0.0  ;;  %v1656_v33 = vmax.f32 %v3519_v13, 0.0  ;;  %v4149_v13 = vld [vmem:[#allocation7 + $0x360] ss:$16 sps:$4 sm:$0xff]   ;;  %v4157_v15 = vld [vmem:[#allocation7 + $0x384] ss:$16 sps:$4 sm:$0xff]  }
 0x1eb   : > { %v1657_v29 = vmax.f32 %v3488_v16, 0.0  ;;  %v1659_v30 = vmax.f32 %v3520_v17, 0.0  ;;  %2630 = vmatprep.subr.bf16.mxu0 %v4139_v7  ;;  %2856 = vmatprep.subr.bf16.mxu1 %v4142_v9 }
 0x1ec   : > { %v1658_v34 = vmax.f32 %v3489_v20, 0.0  ;;  %v1660_v38 = vmax.f32 %v3521_v21, 0.0  ;;  %v4160_v20 = vld [vmem:[#allocation7 + $0x38c] ss:$16 sps:$4 sm:$0xff]  }
 0x1ed   : > { %v1697_v45 = vpack.c.bf16 %v1657_v29, %v1653_v26  ;;  %v4722_v46 = vpack.c.bf16 %v1659_v30, %v1655_v28 }
 0x1ee   : > { %v1698_v47 = vpack.c.bf16 %v1658_v34, %v1654_v32  ;;  %v4724_v48 = vpack.c.bf16 %v1660_v38, %v1656_v33  ;;  %v1368_v49 = vpop.f32.mrb[24].mxu0  ;;  %v1594_v50 = vpop.f32.mrb[24].mxu1  ;;  %2631 = vmatpush1.bf16.msra.mxu0 %v4137_v22  ;;  %2857 = vmatpush1.bf16.msra.mxu1 %v4140_v23  ;;  %v4155_v33 = vld [vmem:[#allocation7 + $0x380] ss:$16 sps:$4 sm:$0xff]   ;;  %v4158_v34 = vld [vmem:[#allocation7 + $0x388] ss:$16 sps:$4 sm:$0xff]  }
 0x1ef   : > { %v3490_v55 = vadd.f32 %v1368_v49, %v4640_v41  ;;  %v3522_v56 = vadd.f32 %v1594_v50, %v4644_v42  ;;  %v1370_v57 = vpop.f32.mrb[25].mxu0  ;;  %v1596_v58 = vpop.f32.mrb[25].mxu1  ;;  %2632 = vmatprep.subr.bf16.mxu0 %v4145_v24  ;;  %2858 = vmatprep.subr.bf16.mxu1 %v4148_v31  ;;  %v4163_v50 = vld [vmem:[#allocation7 + $0x3a4] ss:$16 sps:$4 sm:$0xff]  }
 0x1f0   : > { %v3491_v63 = vadd.f32 %v1370_v57, %v4648_v43  ;;  %v3523_v0 = vadd.f32 %v1596_v58, %v4652_v44  ;;  %v1372_v1 = vpop.f32.mrb[26].mxu0  ;;  %v1598_v2 = vpop.f32.mrb[26].mxu1  ;;  %2581 = vmatprep.mubr.bf16.mxu0 %v1698_v47  ;;  %2807 = vmatprep.mubr.bf16.mxu1 %v1698_v47 }
 0x1f1   : > { %v3492_v3 = vadd.f32 %v1372_v1, %v4640_v41  ;;  %v3524_v4 = vadd.f32 %v1598_v2, %v4644_v42  ;;  %v1374_v5 = vpop.f32.mrb[27].mxu0  ;;  %v1600_v7 = vpop.f32.mrb[27].mxu1  ;;  %2582 = vmatmul.mubr.bf16.gmra.mrb[52].mxu0 %v1697_v45  ;;  %2808 = vmatmul.mubr.bf16.gmra.mrb[52].mxu1 %v1697_v45  ;;  %v1661_v16 = vmax.f32 %v3490_v55, 0.0  ;;  %v1663_v17 = vmax.f32 %v3522_v56, 0.0  ;;  %v4161_v2 = vld [vmem:[#allocation7 + $0x3a0] ss:$16 sps:$4 sm:$0xff]  }
 0x1f2   : > { %v3493_v9 = vadd.f32 %v1374_v5, %v4648_v43  ;;  %v3525_v11 = vadd.f32 %v1600_v7, %v4652_v44  ;;  %2633 = vmatpush1.bf16.msra.mxu0 %v4143_v52  ;;  %2859 = vmatpush1.bf16.msra.mxu1 %v4146_v54  ;;  %v1662_v21 = vmax.f32 %v3491_v63, 0.0  ;;  %v1664_v22 = vmax.f32 %v3523_v0, 0.0  ;;  %v4166_v52 = vld [vmem:[#allocation7 + $0x3ac] ss:$16 sps:$4 sm:$0xff]  }
 0x1f3   : > { %v1665_v18 = vmax.f32 %v3492_v3, 0.0  ;;  %v1667_v19 = vmax.f32 %v3524_v4, 0.0  ;;  %2634 = vmatprep.subr.bf16.mxu0 %v4151_v60  ;;  %2860 = vmatprep.subr.bf16.mxu1 %v4154_v62  ;;  %v4164_v3 = vld [vmem:[#allocation7 + $0x3a8] ss:$16 sps:$4 sm:$0xff]   ;;  %v4169_v4 = vld [vmem:[#allocation7 + $0x3c4] ss:$16 sps:$4 sm:$0xff]  }
 0x1f4   : > { %v1666_v23 = vmax.f32 %v3493_v9, 0.0  ;;  %v1668_v24 = vmax.f32 %v3525_v11, 0.0 }
 0x1f5   : > { %v1701_v26 = vpack.c.bf16 %v1665_v18, %v1661_v16  ;;  %v4734_v28 = vpack.c.bf16 %v1667_v19, %v1663_v17  ;;  %v4167_v18 = vld [vmem:[#allocation7 + $0x3c0] ss:$16 sps:$4 sm:$0xff]   ;;  %v4170_v19 = vld [vmem:[#allocation7 + $0x3c8] ss:$16 sps:$4 sm:$0xff]  }
 0x1f6   : > { %v1702_v29 = vpack.c.bf16 %v1666_v23, %v1662_v21  ;;  %v4736_v30 = vpack.c.bf16 %v1668_v24, %v1664_v22  ;;  %v1378_v31 = vpop.f32.mrb[28].mxu0  ;;  %v1604_v32 = vpop.f32.mrb[28].mxu1  ;;  %2635 = vmatpush1.bf16.msra.mxu0 %v4149_v13  ;;  %2861 = vmatpush1.bf16.msra.mxu1 %v4152_v14  ;;  %v4178_v21 = vld [vmem:[#allocation7 + $0x3ec] ss:$16 sps:$4 sm:$0xff]   ;;  %v4173_v22 = vld [vmem:[#allocation7 + $0x3e0] ss:$16 sps:$4 sm:$0xff]  }
 0x1f7   : > { %v3494_v38 = vadd.f32 %v1378_v31, %v4640_v41  ;;  %v3526_v45 = vadd.f32 %v1604_v32, %v4644_v42  ;;  %v1380_v47 = vpop.f32.mrb[29].mxu0  ;;  %v1606_v49 = vpop.f32.mrb[29].mxu1  ;;  %2636 = vmatprep.subr.bf16.mxu0 %v4157_v15  ;;  %2862 = vmatprep.subr.bf16.mxu1 %v4160_v20  ;;  %v4175_v20 = vld [vmem:[#allocation7 + $0x3e4] ss:$16 sps:$4 sm:$0xff]   ;;  %v4176_v23 = vld [vmem:[#allocation7 + $0x3e8] ss:$16 sps:$4 sm:$0xff]  }
 0x1f8   : > { %v3495_v54 = vadd.f32 %v1380_v47, %v4648_v43  ;;  %v3527_v55 = vadd.f32 %v1606_v49, %v4652_v44  ;;  %v1382_v56 = vpop.f32.mrb[30].mxu0  ;;  %v1608_v57 = vpop.f32.mrb[30].mxu1  ;;  %2591 = vmatprep.mubr.bf16.mxu0 %v1702_v29  ;;  %2817 = vmatprep.mubr.bf16.mxu1 %v1702_v29 }
 0x1f9   : > { %v3496_v58 = vadd.f32 %v1382_v56, %v4640_v41  ;;  %v3528_v60 = vadd.f32 %v1608_v57, %v4644_v42  ;;  %v1384_v62 = vpop.f32.mrb[31].mxu0  ;;  %v1610_v63 = vpop.f32.mrb[31].mxu1  ;;  %2592 = vmatmul.mubr.bf16.gmra.mrb[56].mxu0 %v1701_v26  ;;  %2818 = vmatmul.mubr.bf16.gmra.mrb[56].mxu1 %v1701_v26  ;;  %v1669_v5 = vmax.f32 %v3494_v38, 0.0  ;;  %v1671_v7 = vmax.f32 %v3526_v45, 0.0  ;;  %v4172_v41 = vld [vmem:[#allocation7 + $0x3cc] ss:$16 sps:$4 sm:$0xff]  }
 0x1fa   : > { %v3497_v0 = vadd.f32 %v1384_v62, %v4648_v43  ;;  %v3529_v1 = vadd.f32 %v1610_v63, %v4652_v44  ;;  %2637 = vmatpush1.bf16.msra.mxu0 %v4155_v33  ;;  %2863 = vmatpush1.bf16.msra.mxu1 %v4158_v34  ;;  %v1670_v42 = vmax.f32 %v3495_v54, 0.0  ;;  %v1672_v13 = vmax.f32 %v3527_v55, 0.0 }
 0x1fb   : > { %v1673_v9 = vmax.f32 %v3496_v58, 0.0  ;;  %v1675_v11 = vmax.f32 %v3528_v60, 0.0  ;;  %2638 = vmatprep.subr.bf16.mxu0 %v4163_v50  ;;  %2864 = vmatprep.subr.bf16.mxu1 %v4166_v52 }
 0x1fc   : > { %v1674_v14 = vmax.f32 %v3497_v0, 0.0  ;;  %v1676_v15 = vmax.f32 %v3529_v1, 0.0 }
 0x1fd   : > { %v1705_v16 = vpack.c.bf16 %v1673_v9, %v1669_v5  ;;  %v1707_v43 = vpack.c.bf16 %v1675_v11, %v1671_v7 }
 0x1fe   : > { %v1706_v17 = vpack.c.bf16 %v1674_v14, %v1670_v42  ;;  %v1708_v44 = vpack.c.bf16 %v1676_v15, %v1672_v13  ;;  %2639 = vmatpush1.bf16.msra.mxu0 %v4161_v2  ;;  %2865 = vmatpush1.bf16.msra.mxu1 %v4164_v3 }
 0x1ff   : > { %2640 = vmatprep.subr.bf16.mxu0 %v4169_v4  ;;  %2866 = vmatprep.subr.bf16.mxu1 %v4172_v41 }
 0x200   : > { %2601 = vmatprep.mubr.bf16.mxu0 %v1706_v17  ;;  %2827 = vmatprep.mubr.bf16.mxu1 %v1706_v17 }
 0x201   : > { %2602 = vmatmul.mubr.bf16.gmra.mrb[60].mxu0 %v1705_v16  ;;  %2828 = vmatmul.mubr.bf16.gmra.mrb[60].mxu1 %v1705_v16 }
 0x202   : > { %2641 = vmatpush1.bf16.msra.mxu0 %v4167_v18  ;;  %2644 = vmatprep.mubr.bf16.mxu0 %v4664_v8 }
 0x203   : > { %2867 = vmatpush1.bf16.msra.mxu1 %v4170_v19  ;;  %2870 = vmatprep.mubr.bf16.mxu1 %v4664_v8 }
 0x204   : > { %2642 = vmatprep.subr.bf16.mxu0 %v4175_v20  ;;  %2868 = vmatprep.subr.bf16.mxu1 %v4178_v21 }
 0x206   : > { %2643 = vmatpush1.bf16.msra.mxu0 %v4173_v22 }
 0x207   : > { %2869 = vmatpush1.bf16.msra.mxu1 %v4176_v23 }
 0x209   : > { %2645 = vmatmul.mubr.bf16.vlgmr.msra.gmra.mrb[32].mxu0 %v4662_v6 }
 0x20a   : > { %2871 = vmatmul.mubr.bf16.vlgmr.msra.gmra.mrb[32].mxu1 %v4662_v6  ;;  %2654 = vmatprep.mubr.bf16.mxu0 %v4676_v53  ;;  %v1837_v6 = vld [vmem:[%s4980_s4] sm:$0xf] }
 0x20b   : > { %2880 = vmatprep.mubr.bf16.mxu1 %v4676_v53  ;;  %v4779_v8 = vrot.slane %v1837_v6, %v503_v36  ;;  %v4787_v53 = vrot.slane %v1837_v6, %v507_v39 }
 0x211   : > { %2655 = vmatmul.mubr.bf16.gmra.mrb[36].mxu0 %v4674_v51 }
 0x212   : > { %2881 = vmatmul.mubr.bf16.gmra.mrb[36].mxu1 %v4674_v51  ;;  %2664 = vmatprep.mubr.bf16.mxu0 %v4688_v27  ;;  %v4783_v51 = vrot.slane %v1837_v6, %v511_v37 }
 0x213   : > { %2890 = vmatprep.mubr.bf16.mxu1 %v4688_v27 }
 0x219   : > { %2665 = vmatmul.mubr.bf16.gmra.mrb[40].mxu0 %v4686_v25 }
 0x21a   : > { %2891 = vmatmul.mubr.bf16.gmra.mrb[40].mxu1 %v4686_v25  ;;  %2674 = vmatprep.mubr.bf16.mxu0 %v4700_v12  ;;  %v4791_v25 = vrot.slane %v1837_v6, %v515_v40 }
 0x21b   : > { %2900 = vmatprep.mubr.bf16.mxu1 %v4700_v12 }
 0x221   : > { %2675 = vmatmul.mubr.bf16.gmra.mrb[44].mxu0 %v4698_v10 }
 0x222   : > { %2901 = vmatmul.mubr.bf16.gmra.mrb[44].mxu1 %v4698_v10  ;;  %2684 = vmatprep.mubr.bf16.mxu0 %v4712_v61 }
 0x223   : > { %2910 = vmatprep.mubr.bf16.mxu1 %v4712_v61 }
 0x229   : > { %2685 = vmatmul.mubr.bf16.gmra.mrb[48].mxu0 %v4710_v59 }
 0x22a   : > { %2911 = vmatmul.mubr.bf16.gmra.mrb[48].mxu1 %v4710_v59  ;;  %2694 = vmatprep.mubr.bf16.mxu0 %v4724_v48 }
 0x22b   : > { %2920 = vmatprep.mubr.bf16.mxu1 %v4724_v48 }
 0x231   : > { %2695 = vmatmul.mubr.bf16.gmra.mrb[52].mxu0 %v4722_v46 }
 0x232   : > { %2921 = vmatmul.mubr.bf16.gmra.mrb[52].mxu1 %v4722_v46  ;;  %2704 = vmatprep.mubr.bf16.mxu0 %v4736_v30 }
 0x233   : > { %2930 = vmatprep.mubr.bf16.mxu1 %v4736_v30 }
 0x239   : > { %2705 = vmatmul.mubr.bf16.gmra.mrb[56].mxu0 %v4734_v28 }
 0x23a   : > { %2931 = vmatmul.mubr.bf16.gmra.mrb[56].mxu1 %v4734_v28  ;;  %2714 = vmatprep.mubr.bf16.mxu0 %v1708_v44 }
 0x23b   : > { %2940 = vmatprep.mubr.bf16.mxu1 %v1708_v44 }
 0x241   : > { %2715 = vmatmul.mubr.bf16.gmra.mrb[60].mxu0 %v1707_v43 }
 0x242   : > { %2941 = vmatmul.mubr.bf16.gmra.mrb[60].mxu1 %v1707_v43 }
 0x2dc   : > { %v2646_v27 = vpop.f32.mrb[32].mxu0 }
 0x2dd   : > { %v3530_v10 = vadd.f32 %v2646_v27, %v4779_v8  ;;  %v2872_v12 = vpop.f32.mrb[32].mxu1  ;;  %v2648_v59 = vpop.f32.mrb[33].mxu0 }
 0x2de   : > { %v3562_v36 = vadd.f32 %v2872_v12, %v4783_v51  ;;  %v3531_v61 = vadd.f32 %v2648_v59, %v4787_v53  ;;  %v2874_v37 = vpop.f32.mrb[33].mxu1  ;;  %v2650_v46 = vpop.f32.mrb[34].mxu0 }
 0x2df   : > { %v2951_v48 = vmax.f32 %v3530_v10, 0.0  ;;  %v3563_v39 = vadd.f32 %v2874_v37, %v4791_v25  ;;  %v3532_v24 = vadd.f32 %v2650_v46, %v4779_v8  ;;  %v2876_v35 = vpop.f32.mrb[34].mxu1  ;;  %v2652_v40 = vpop.f32.mrb[35].mxu0 }
 0x2e0   : > { %v2953_v26 = vmax.f32 %v3562_v36, 0.0  ;;  %v2952_v28 = vmax.f32 %v3531_v61, 0.0  ;;  %v3564_v29 = vadd.f32 %v2876_v35, %v4783_v51  ;;  %v3533_v30 = vadd.f32 %v2652_v40, %v4787_v53  ;;  %v2878_v31 = vpop.f32.mrb[35].mxu1 }
 0x2e1   : > { %3015 = vst [vmem:[%s4802_s11] sm:$0xff] %v2951_v48  ;;  %v2954_v32 = vmax.f32 %v3563_v39, 0.0  ;;  %v2955_v33 = vmax.f32 %v3532_v24, 0.0  ;;  %v3565_v34 = vadd.f32 %v2878_v31, %v4791_v25 }
 0x2e2   : > { %3017 = vst [vmem:[%s4802_s11 + $0x10] sm:$0xff] %v2953_v26  ;;  %3016 = vst [vmem:[%s4802_s11 + $0x8] sm:$0xff] %v2952_v28  ;;  %v2957_v38 = vmax.f32 %v3564_v29, 0.0  ;;  %v2956_v45 = vmax.f32 %v3533_v30, 0.0 }
 0x2e3   : > { %3018 = vst [vmem:[%s4802_s11 + $0x18] sm:$0xff] %v2954_v32  ;;  %3019 = vst [vmem:[%s4802_s11 + $0x20] sm:$0xff] %v2955_v33  ;;  %v2958_v47 = vmax.f32 %v3565_v34, 0.0 }
 0x2e4   : > { %3021 = vst [vmem:[%s4802_s11 + $0x30] sm:$0xff] %v2957_v38  ;;  %3020 = vst [vmem:[%s4802_s11 + $0x28] sm:$0xff] %v2956_v45  ;;  %v2656_v49 = vpop.f32.mrb[36].mxu0 }
 0x2e5   : > { %3022 = vst [vmem:[%s4802_s11 + $0x38] sm:$0xff] %v2958_v47  ;;  %v3534_v50 = vadd.f32 %v2656_v49, %v4779_v8  ;;  %v2882_v52 = vpop.f32.mrb[36].mxu1  ;;  %v2658_v54 = vpop.f32.mrb[37].mxu0 }
 0x2e6   : > { %v3566_v55 = vadd.f32 %v2882_v52, %v4783_v51  ;;  %v3535_v56 = vadd.f32 %v2658_v54, %v4787_v53  ;;  %v2884_v57 = vpop.f32.mrb[37].mxu1  ;;  %v2660_v58 = vpop.f32.mrb[38].mxu0 }
 0x2e7   : > { %v2959_v60 = vmax.f32 %v3534_v50, 0.0  ;;  %v3567_v62 = vadd.f32 %v2884_v57, %v4791_v25  ;;  %v3536_v63 = vadd.f32 %v2660_v58, %v4779_v8  ;;  %v2886_v0 = vpop.f32.mrb[38].mxu1  ;;  %v2662_v1 = vpop.f32.mrb[39].mxu0 }
 0x2e8   : > { %v2961_v2 = vmax.f32 %v3566_v55, 0.0  ;;  %v2960_v3 = vmax.f32 %v3535_v56, 0.0  ;;  %v3568_v4 = vadd.f32 %v2886_v0, %v4783_v51  ;;  %v3537_v5 = vadd.f32 %v2662_v1, %v4787_v53  ;;  %v2888_v7 = vpop.f32.mrb[39].mxu1 }
 0x2e9   : > { %3023 = vst [vmem:[%s4802_s11 + $0x40] sm:$0xff] %v2959_v60  ;;  %v2962_v9 = vmax.f32 %v3567_v62, 0.0  ;;  %v2963_v11 = vmax.f32 %v3536_v63, 0.0  ;;  %v3569_v41 = vadd.f32 %v2888_v7, %v4791_v25 }
 0x2ea   : > { %3025 = vst [vmem:[%s4802_s11 + $0x50] sm:$0xff] %v2961_v2  ;;  %3024 = vst [vmem:[%s4802_s11 + $0x48] sm:$0xff] %v2960_v3  ;;  %v2965_v42 = vmax.f32 %v3568_v4, 0.0  ;;  %v2964_v13 = vmax.f32 %v3537_v5, 0.0 }
 0x2eb   : > { %3026 = vst [vmem:[%s4802_s11 + $0x58] sm:$0xff] %v2962_v9  ;;  %3027 = vst [vmem:[%s4802_s11 + $0x60] sm:$0xff] %v2963_v11  ;;  %v2966_v14 = vmax.f32 %v3569_v41, 0.0 }
 0x2ec   : > { %3029 = vst [vmem:[%s4802_s11 + $0x70] sm:$0xff] %v2965_v42  ;;  %3028 = vst [vmem:[%s4802_s11 + $0x68] sm:$0xff] %v2964_v13  ;;  %v2666_v15 = vpop.f32.mrb[40].mxu0 }
 0x2ed   : > { %3030 = vst [vmem:[%s4802_s11 + $0x78] sm:$0xff] %v2966_v14  ;;  %v3538_v16 = vadd.f32 %v2666_v15, %v4779_v8  ;;  %v2892_v43 = vpop.f32.mrb[40].mxu1  ;;  %v2668_v17 = vpop.f32.mrb[41].mxu0 }
 0x2ee   : > { %v3570_v44 = vadd.f32 %v2892_v43, %v4783_v51  ;;  %v3539_v18 = vadd.f32 %v2668_v17, %v4787_v53  ;;  %v2894_v19 = vpop.f32.mrb[41].mxu1  ;;  %v2670_v20 = vpop.f32.mrb[42].mxu0 }
 0x2ef   : > { %v2967_v21 = vmax.f32 %v3538_v16, 0.0  ;;  %v3571_v22 = vadd.f32 %v2894_v19, %v4791_v25  ;;  %v3540_v23 = vadd.f32 %v2670_v20, %v4779_v8  ;;  %v2896_v6 = vpop.f32.mrb[42].mxu1  ;;  %v2672_v27 = vpop.f32.mrb[43].mxu0 }
 0x2f0   : > { %v2969_v10 = vmax.f32 %v3570_v44, 0.0  ;;  %v2968_v12 = vmax.f32 %v3539_v18, 0.0  ;;  %v3572_v59 = vadd.f32 %v2896_v6, %v4783_v51  ;;  %v3541_v36 = vadd.f32 %v2672_v27, %v4787_v53  ;;  %v2898_v61 = vpop.f32.mrb[43].mxu1 }
 0x2f1   : > { %3031 = vst [vmem:[%s4802_s11 + $0x80] sm:$0xff] %v2967_v21  ;;  %v2970_v37 = vmax.f32 %v3571_v22, 0.0  ;;  %v2971_v46 = vmax.f32 %v3540_v23, 0.0  ;;  %v3573_v48 = vadd.f32 %v2898_v61, %v4791_v25 }
 0x2f2   : > { %3033 = vst [vmem:[%s4802_s11 + $0x90] sm:$0xff] %v2969_v10  ;;  %3032 = vst [vmem:[%s4802_s11 + $0x88] sm:$0xff] %v2968_v12  ;;  %v2973_v39 = vmax.f32 %v3572_v59, 0.0  ;;  %v2972_v24 = vmax.f32 %v3541_v36, 0.0 }
 0x2f3   : > { %3034 = vst [vmem:[%s4802_s11 + $0x98] sm:$0xff] %v2970_v37  ;;  %3035 = vst [vmem:[%s4802_s11 + $0xa0] sm:$0xff] %v2971_v46  ;;  %v2974_v35 = vmax.f32 %v3573_v48, 0.0 }
 0x2f4   : > { %3037 = vst [vmem:[%s4802_s11 + $0xb0] sm:$0xff] %v2973_v39  ;;  %3036 = vst [vmem:[%s4802_s11 + $0xa8] sm:$0xff] %v2972_v24  ;;  %v2676_v40 = vpop.f32.mrb[44].mxu0 }
 0x2f5   : > { %3038 = vst [vmem:[%s4802_s11 + $0xb8] sm:$0xff] %v2974_v35  ;;  %v3542_v26 = vadd.f32 %v2676_v40, %v4779_v8  ;;  %v2902_v28 = vpop.f32.mrb[44].mxu1  ;;  %v2678_v29 = vpop.f32.mrb[45].mxu0 }
 0x2f6   : > { %v3574_v30 = vadd.f32 %v2902_v28, %v4783_v51  ;;  %v3543_v31 = vadd.f32 %v2678_v29, %v4787_v53  ;;  %v2904_v32 = vpop.f32.mrb[45].mxu1  ;;  %v2680_v33 = vpop.f32.mrb[46].mxu0 }
 0x2f7   : > { %v2975_v34 = vmax.f32 %v3542_v26, 0.0  ;;  %v3575_v38 = vadd.f32 %v2904_v32, %v4791_v25  ;;  %v3544_v45 = vadd.f32 %v2680_v33, %v4779_v8  ;;  %v2906_v47 = vpop.f32.mrb[46].mxu1  ;;  %v2682_v49 = vpop.f32.mrb[47].mxu0 }
 0x2f8   : > { %v2977_v50 = vmax.f32 %v3574_v30, 0.0  ;;  %v2976_v52 = vmax.f32 %v3543_v31, 0.0  ;;  %v3576_v54 = vadd.f32 %v2906_v47, %v4783_v51  ;;  %v3545_v55 = vadd.f32 %v2682_v49, %v4787_v53  ;;  %v2908_v56 = vpop.f32.mrb[47].mxu1 }
 0x2f9   : > { %3039 = vst [vmem:[%s4802_s11 + $0xc0] sm:$0xff] %v2975_v34  ;;  %v2978_v57 = vmax.f32 %v3575_v38, 0.0  ;;  %v2979_v58 = vmax.f32 %v3544_v45, 0.0  ;;  %v3577_v60 = vadd.f32 %v2908_v56, %v4791_v25 }
 0x2fa   : > { %3041 = vst [vmem:[%s4802_s11 + $0xd0] sm:$0xff] %v2977_v50  ;;  %3040 = vst [vmem:[%s4802_s11 + $0xc8] sm:$0xff] %v2976_v52  ;;  %v2981_v62 = vmax.f32 %v3576_v54, 0.0  ;;  %v2980_v63 = vmax.f32 %v3545_v55, 0.0 }
 0x2fb   : > { %3042 = vst [vmem:[%s4802_s11 + $0xd8] sm:$0xff] %v2978_v57  ;;  %3043 = vst [vmem:[%s4802_s11 + $0xe0] sm:$0xff] %v2979_v58  ;;  %v2982_v0 = vmax.f32 %v3577_v60, 0.0 }
 0x2fc   : > { %3045 = vst [vmem:[%s4802_s11 + $0xf0] sm:$0xff] %v2981_v62  ;;  %3044 = vst [vmem:[%s4802_s11 + $0xe8] sm:$0xff] %v2980_v63  ;;  %v2686_v1 = vpop.f32.mrb[48].mxu0 }
 0x2fd   : > { %3046 = vst [vmem:[%s4802_s11 + $0xf8] sm:$0xff] %v2982_v0  ;;  %v3546_v2 = vadd.f32 %v2686_v1, %v4779_v8  ;;  %v2912_v3 = vpop.f32.mrb[48].mxu1  ;;  %v2688_v4 = vpop.f32.mrb[49].mxu0 }
 0x2fe   : > { %v3578_v5 = vadd.f32 %v2912_v3, %v4783_v51  ;;  %v3547_v7 = vadd.f32 %v2688_v4, %v4787_v53  ;;  %v2914_v9 = vpop.f32.mrb[49].mxu1  ;;  %v2690_v11 = vpop.f32.mrb[50].mxu0 }
 0x2ff   : > { %v2983_v41 = vmax.f32 %v3546_v2, 0.0  ;;  %v3579_v42 = vadd.f32 %v2914_v9, %v4791_v25  ;;  %v3548_v13 = vadd.f32 %v2690_v11, %v4779_v8  ;;  %v2916_v14 = vpop.f32.mrb[50].mxu1  ;;  %v2692_v15 = vpop.f32.mrb[51].mxu0 }
 0x300   : > { %v2985_v16 = vmax.f32 %v3578_v5, 0.0  ;;  %v2984_v43 = vmax.f32 %v3547_v7, 0.0  ;;  %v3580_v17 = vadd.f32 %v2916_v14, %v4783_v51  ;;  %v3549_v44 = vadd.f32 %v2692_v15, %v4787_v53  ;;  %v2918_v18 = vpop.f32.mrb[51].mxu1 }
 0x301   : > { %3047 = vst [vmem:[%s4802_s11 + $0x100] sm:$0xff] %v2983_v41  ;;  %v2986_v19 = vmax.f32 %v3579_v42, 0.0  ;;  %v2987_v20 = vmax.f32 %v3548_v13, 0.0  ;;  %v3581_v21 = vadd.f32 %v2918_v18, %v4791_v25 }
 0x302   : > { %3049 = vst [vmem:[%s4802_s11 + $0x110] sm:$0xff] %v2985_v16  ;;  %3048 = vst [vmem:[%s4802_s11 + $0x108] sm:$0xff] %v2984_v43  ;;  %v2989_v22 = vmax.f32 %v3580_v17, 0.0  ;;  %v2988_v23 = vmax.f32 %v3549_v44, 0.0 }
 0x303   : > { %3050 = vst [vmem:[%s4802_s11 + $0x118] sm:$0xff] %v2986_v19  ;;  %3051 = vst [vmem:[%s4802_s11 + $0x120] sm:$0xff] %v2987_v20  ;;  %v2990_v6 = vmax.f32 %v3581_v21, 0.0 }
 0x304   : > { %3053 = vst [vmem:[%s4802_s11 + $0x130] sm:$0xff] %v2989_v22  ;;  %3052 = vst [vmem:[%s4802_s11 + $0x128] sm:$0xff] %v2988_v23  ;;  %v2696_v27 = vpop.f32.mrb[52].mxu0 }
 0x305   : > { %3054 = vst [vmem:[%s4802_s11 + $0x138] sm:$0xff] %v2990_v6  ;;  %v3550_v10 = vadd.f32 %v2696_v27, %v4779_v8  ;;  %v2922_v12 = vpop.f32.mrb[52].mxu1  ;;  %v2698_v59 = vpop.f32.mrb[53].mxu0 }
 0x306   : > { %v3582_v36 = vadd.f32 %v2922_v12, %v4783_v51  ;;  %v3551_v61 = vadd.f32 %v2698_v59, %v4787_v53  ;;  %v2924_v37 = vpop.f32.mrb[53].mxu1  ;;  %v2700_v46 = vpop.f32.mrb[54].mxu0 }
 0x307   : > { %v2991_v48 = vmax.f32 %v3550_v10, 0.0  ;;  %v3583_v39 = vadd.f32 %v2924_v37, %v4791_v25  ;;  %v3552_v24 = vadd.f32 %v2700_v46, %v4779_v8  ;;  %v2926_v35 = vpop.f32.mrb[54].mxu1  ;;  %v2702_v40 = vpop.f32.mrb[55].mxu0 }
 0x308   : > { %v2993_v26 = vmax.f32 %v3582_v36, 0.0  ;;  %v2992_v28 = vmax.f32 %v3551_v61, 0.0  ;;  %v3584_v29 = vadd.f32 %v2926_v35, %v4783_v51  ;;  %v3553_v30 = vadd.f32 %v2702_v40, %v4787_v53  ;;  %v2928_v31 = vpop.f32.mrb[55].mxu1 }
 0x309   : > { %3055 = vst [vmem:[%s4802_s11 + $0x140] sm:$0xff] %v2991_v48  ;;  %v2994_v32 = vmax.f32 %v3583_v39, 0.0  ;;  %v2995_v33 = vmax.f32 %v3552_v24, 0.0  ;;  %v3585_v34 = vadd.f32 %v2928_v31, %v4791_v25 }
 0x30a   : > { %3057 = vst [vmem:[%s4802_s11 + $0x150] sm:$0xff] %v2993_v26  ;;  %3056 = vst [vmem:[%s4802_s11 + $0x148] sm:$0xff] %v2992_v28  ;;  %v2997_v38 = vmax.f32 %v3584_v29, 0.0  ;;  %v2996_v45 = vmax.f32 %v3553_v30, 0.0 }
 0x30b   : > { %3058 = vst [vmem:[%s4802_s11 + $0x158] sm:$0xff] %v2994_v32  ;;  %3059 = vst [vmem:[%s4802_s11 + $0x160] sm:$0xff] %v2995_v33  ;;  %v2998_v47 = vmax.f32 %v3585_v34, 0.0 }
 0x30c   : > { %3061 = vst [vmem:[%s4802_s11 + $0x170] sm:$0xff] %v2997_v38  ;;  %3060 = vst [vmem:[%s4802_s11 + $0x168] sm:$0xff] %v2996_v45  ;;  %v2706_v49 = vpop.f32.mrb[56].mxu0 }
 0x30d   : > { %3062 = vst [vmem:[%s4802_s11 + $0x178] sm:$0xff] %v2998_v47  ;;  %v3554_v50 = vadd.f32 %v2706_v49, %v4779_v8  ;;  %v2932_v52 = vpop.f32.mrb[56].mxu1  ;;  %v2708_v54 = vpop.f32.mrb[57].mxu0 }
 0x30e   : > { %v3586_v55 = vadd.f32 %v2932_v52, %v4783_v51  ;;  %v3555_v56 = vadd.f32 %v2708_v54, %v4787_v53  ;;  %v2934_v57 = vpop.f32.mrb[57].mxu1  ;;  %v2710_v58 = vpop.f32.mrb[58].mxu0 }
 0x30f   : > { %v2999_v60 = vmax.f32 %v3554_v50, 0.0  ;;  %v3587_v62 = vadd.f32 %v2934_v57, %v4791_v25  ;;  %v3556_v63 = vadd.f32 %v2710_v58, %v4779_v8  ;;  %v2936_v0 = vpop.f32.mrb[58].mxu1  ;;  %v2712_v1 = vpop.f32.mrb[59].mxu0 }
 0x310   : > { %v3001_v2 = vmax.f32 %v3586_v55, 0.0  ;;  %v3000_v3 = vmax.f32 %v3555_v56, 0.0  ;;  %v3588_v4 = vadd.f32 %v2936_v0, %v4783_v51  ;;  %v3557_v5 = vadd.f32 %v2712_v1, %v4787_v53  ;;  %v2938_v7 = vpop.f32.mrb[59].mxu1 }
 0x311   : > { %3063 = vst [vmem:[%s4802_s11 + $0x180] sm:$0xff] %v2999_v60  ;;  %v3002_v9 = vmax.f32 %v3587_v62, 0.0  ;;  %v3003_v11 = vmax.f32 %v3556_v63, 0.0  ;;  %v3589_v41 = vadd.f32 %v2938_v7, %v4791_v25 }
 0x312   : > { %3065 = vst [vmem:[%s4802_s11 + $0x190] sm:$0xff] %v3001_v2  ;;  %3064 = vst [vmem:[%s4802_s11 + $0x188] sm:$0xff] %v3000_v3  ;;  %v3005_v42 = vmax.f32 %v3588_v4, 0.0  ;;  %v3004_v13 = vmax.f32 %v3557_v5, 0.0 }
 0x313   : > { %3066 = vst [vmem:[%s4802_s11 + $0x198] sm:$0xff] %v3002_v9  ;;  %3067 = vst [vmem:[%s4802_s11 + $0x1a0] sm:$0xff] %v3003_v11  ;;  %v3006_v14 = vmax.f32 %v3589_v41, 0.0 }
 0x314   : > { %3069 = vst [vmem:[%s4802_s11 + $0x1b0] sm:$0xff] %v3005_v42  ;;  %3068 = vst [vmem:[%s4802_s11 + $0x1a8] sm:$0xff] %v3004_v13  ;;  %v2716_v15 = vpop.f32.mrb[60].mxu0 }
 0x315   : > { %3070 = vst [vmem:[%s4802_s11 + $0x1b8] sm:$0xff] %v3006_v14  ;;  %v3558_v16 = vadd.f32 %v2716_v15, %v4779_v8  ;;  %v2942_v43 = vpop.f32.mrb[60].mxu1  ;;  %v2718_v17 = vpop.f32.mrb[61].mxu0 }
 0x316   : > { %v3590_v44 = vadd.f32 %v2942_v43, %v4783_v51  ;;  %v3559_v18 = vadd.f32 %v2718_v17, %v4787_v53  ;;  %v2944_v19 = vpop.f32.mrb[61].mxu1  ;;  %v2720_v20 = vpop.f32.mrb[62].mxu0 }
 0x317   : > { %v3007_v21 = vmax.f32 %v3558_v16, 0.0  ;;  %v3591_v22 = vadd.f32 %v2944_v19, %v4791_v25  ;;  %v3560_v23 = vadd.f32 %v2720_v20, %v4779_v8  ;;  %v2946_v6 = vpop.f32.mrb[62].mxu1  ;;  %v2722_v27 = vpop.f32.mrb[63].mxu0 }
 0x318   : > { %v3009_v10 = vmax.f32 %v3590_v44, 0.0  ;;  %v3008_v12 = vmax.f32 %v3559_v18, 0.0  ;;  %v3592_v59 = vadd.f32 %v2946_v6, %v4783_v51  ;;  %v3561_v36 = vadd.f32 %v2722_v27, %v4787_v53  ;;  %v2948_v61 = vpop.f32.mrb[63].mxu1 }
 0x319   : > { %3071 = vst [vmem:[%s4802_s11 + $0x1c0] sm:$0xff] %v3007_v21  ;;  %v3010_v37 = vmax.f32 %v3591_v22, 0.0  ;;  %v3011_v8 = vmax.f32 %v3560_v23, 0.0  ;;  %v3593_v46 = vadd.f32 %v2948_v61, %v4791_v25 }
 0x31a   : > { %3073 = vst [vmem:[%s4802_s11 + $0x1d0] sm:$0xff] %v3009_v10  ;;  %3072 = vst [vmem:[%s4802_s11 + $0x1c8] sm:$0xff] %v3008_v12  ;;  %v3013_v48 = vmax.f32 %v3592_v59, 0.0  ;;  %v3012_v39 = vmax.f32 %v3561_v36, 0.0 }
 0x31b   : > { %3074 = vst [vmem:[%s4802_s11 + $0x1d8] sm:$0xff] %v3010_v37  ;;  %3075 = vst [vmem:[%s4802_s11 + $0x1e0] sm:$0xff] %v3011_v8  ;;  %v3014_v51 = vmax.f32 %v3593_v46, 0.0 }
 0x31c   : > { %3077 = vst [vmem:[%s4802_s11 + $0x1f0] sm:$0xff] %v3013_v48  ;;  %3076 = vst [vmem:[%s4802_s11 + $0x1e8] sm:$0xff] %v3012_v39 }
 0x31d   : > { %3078 = vst [vmem:[%s4802_s11 + $0x1f8] sm:$0xff] %v3014_v51 }
 0x31e   : > { %4278 = shalt.err (!%p4275_p2)
}
 0x31f   : > { %s4279_s6 = scalar_lea.hbm %s4925_s16, 8192  ;;  %s4283_s8 = scalar_lea.hbm %s4981_s5, 16384 }
 0x320   : > { %p4280_p13 = scmp.ne.s32.totalorder %s4925_s16, %s4279_s6  ;;  %p4284_p4 = scmp.lt.u32.totalorder %s4925_s16, %s4981_s5 }
 0x321   : > { %p4285_p5 = scmp.lt.u32.totalorder %s4283_s8, %s4279_s6  ;;  %p4287_p11 = scmp.lt.u32.totalorder %s4279_s6, %s4925_s16 }
 0x322   : > { %p4281_p6 = pnand %p4280_p13, %p4995_p0 }
 0x323   : > { %p4286_p8 = por %p4285_p5, %p4284_p4 }
 0x324   : > { %p4282_p10 = pneg %p4281_p6 }
 0x325   : > { %p4288_p1 = por %p4287_p11, %p4286_p8 }
 0x327   : > { %p4289_p3 = pnand %p4288_p1, %p4282_p10 }
 0x329   : > { %4292 = shalt.err (!%p4289_p3)
}
 0x32a   : > { %s4345_s28 = smov 512   ;;  %s4346_s22 = smov 32  }
 0x32b   : > { %3732 = dma.vmem_to_hbm [thread:$0]  (%p4995_p0), %s4927_s30, 8192, %s4925_s16, %s3080_s9, %s4345_s28, %s4345_s28, %s4346_s22  }
 0x32c PF: > { %s3109_s15 = sand.u32 1, %s4323_s18   ;;  %p4996_p7 = scmp.ne.s32.totalorder %s4986_s25, 0 }
 0x32d   : > { %p4997_p9 = scmp.ge.s32.totalorder %s4335_s21, 2  ;;  %s3110_s12 = scalar_lea.sflag [#allocation4], %s3109_s15 }
 0x32f   : > { %p3746_p12 = pnand %p4997_p9, %p4996_p7 }
 0x331   : > { %4318 = dma.done.wait (!%p3746_p12), %s3110_s12, 8192  }
 0x332   : > { %4320 = vsyncadd (!%p3746_p12), %s3110_s12, 4294959104  ;;  %p19_p2 = scmp.ge.s32.totalorder %s4487_s14, 4   ;;  %s4998_s18 = smov %s4327_s19 }
 0x333   : > { %s4999_s19 = smov %s4331_s20  ;;  %s5000_s20 = smov %s4503_s27 }
 0x334   : > { %s5001_s21 = smov %s4487_s14  ;;  %21 = sbr.rel (!%p19_p2) target bundleno = 6 (0x6), region = 93 }
 0x33b   :  { %3115 = vsyncpa [#allocation3], 1 }
 0x33c   :  { %3117 = vsyncpa [#allocation3 + $0x1], 1 }
 0x33d   :  { %3118 = vsyncpa [#allocation6], 1 }
 0x33e   :  { %3119 = vsyncpa [#allocation4], 1 }
 0x33f   :  { %3121 = vsyncpa [#allocation4 + $0x1], 1 }

</bundles_post_ra>
